<compile_context>
chip_gen: v6e
topology: v6e:2x2x1
jax: 0.10.0
libtpu: 0.0.40
codegen_flags: <defaults>
</compile_context>

<pallas_src>
import functools

import jax
import jax.numpy as jnp
from jax import lax
from jax.experimental import pallas as pl
from jax.experimental.pallas import tpu as pltpu


# ------------------------------ Pallas kernel -------------------------------

def _fused_attn_kernel(*refs, num_heads, scale, has_qkv_bias):
    if has_qkv_bias:
        x_ref, wqkv_ref, bqkv_ref, wproj_ref, bproj_ref, o_ref = refs
    else:
        x_ref, wqkv_ref, wproj_ref, bproj_ref, o_ref = refs
        bqkv_ref = None

    N, C = x_ref.shape
    H = num_heads
    D = C // H
    mxu_dtype = wqkv_ref.dtype        # bf16 on the fast path, f32 for exact checks

    # --- fused qkv projection: ONE (N,C)x(C,3C) MXU matmul, f32 accumulation --
    x = x_ref[...].astype(mxu_dtype)
    qkv = jnp.dot(x, wqkv_ref[...], preferred_element_type=jnp.float32)   # (N,3C) f32
    if bqkv_ref is not None:
        qkv = qkv + bqkv_ref[...].astype(jnp.float32)

    # q/k/v are contiguous lane blocks of the fused result.  Fold the attention
    # scale into q ((N,C) multiplies instead of (H,N,N)).
    q_all = (qkv[:, 0:C] * scale).astype(mxu_dtype)
    k_all = qkv[:, C:2 * C].astype(mxu_dtype)
    v_all = qkv[:, 2 * C:3 * C].astype(mxu_dtype)

    w_proj = wproj_ref[...]           # (C, C), VMEM-resident across the grid

    # --- transpose-free per-head attention with the output projection -------
    # accumulated per head:  y = sum_h softmax(q_h k_h^T) v_h @ Wproj[hD:(h+1)D]
    y = jnp.zeros((N, C), jnp.float32)
    for h in range(H):                                   # static unrolled loop
        sl = slice(h * D, (h + 1) * D)
        q_h = q_all[:, sl]                               # (N, D)
        k_h = k_all[:, sl]                               # (N, D)
        v_h = v_all[:, sl]                               # (N, D)

        # scores: contract the shared D axis directly (no K transpose relayout)
        s = lax.dot_general(q_h, k_h, (((1,), (1,)), ((), ())),
                            preferred_element_type=jnp.float32)   # (N, N) f32
        s = s - jnp.max(s, axis=-1, keepdims=True)
        p = jnp.exp(s)                                            # f32 (EUP)
        inv_l = 1.0 / jnp.sum(p, axis=-1, keepdims=True)          # exact, (N,1)

        o_h = jnp.dot(p.astype(mxu_dtype), v_h,
                      preferred_element_type=jnp.float32)         # (N, D) f32
        o_h = o_h * inv_l     # normalization folded into the small (N,D) output

        y = y + jnp.dot(o_h.astype(mxu_dtype), w_proj[sl, :],
                        preferred_element_type=jnp.float32)       # (N, C) f32

    y = y + bproj_ref[...].astype(jnp.float32)
    o_ref[...] = y.astype(o_ref.dtype)


# ------------------------------ Module wrapper -------------------------------

def init_attention_params(key, dim, num_heads=8, qkv_bias=False,
                          mxu_dtype=jnp.bfloat16):
    """Deterministic init mimicking nn.Linear defaults.

    Weights are stored pre-transposed as (in, out) so the kernel computes
    y = x @ W + b directly.  The qkv weight is fused as (dim, 3*dim): its
    column blocks [0:dim], [dim:2*dim], [2*dim:3*dim] correspond to the
    q / k / v row blocks of the PyTorch (3*dim, dim) weight.  Weights are
    stored in `mxu_dtype` (bf16 by default: native MXU rate and half the
    HBM/VMEM bytes); biases stay f32 since they add into f32 accumulators.
    """
    k1, k2, k3, k4 = jax.random.split(key, 4)
    bound = 1.0 / (dim ** 0.5)
    w_qkv = jax.random.uniform(k1, (dim, 3 * dim), jnp.float32, -bound, bound)
    b_qkv = (jax.random.uniform(k2, (1, 3 * dim), jnp.float32, -bound, bound)
             if qkv_bias else None)
    w_proj = jax.random.uniform(k3, (dim, dim), jnp.float32, -bound, bound)
    b_proj = jax.random.uniform(k4, (1, dim), jnp.float32, -bound, bound)
    return dict(w_qkv=w_qkv.astype(mxu_dtype), b_qkv=b_qkv,
                w_proj=w_proj.astype(mxu_dtype), b_proj=b_proj,
                num_heads=num_heads, dim=dim)


def _vmem_limit_bytes():
    """Generation-aware VMEM budget: ~75% of physical per-core VMEM
    (~48 MiB on v7x, ~96 MiB on v5e/v6e), with a safe fallback."""
    try:
        return int(pltpu.get_tpu_info().vmem_capacity_bytes * 3 // 4)
    except Exception:
        return 64 * 1024 * 1024


def attention_forward(params, x, qk_scale=None):
    """x: (B, N, C) -> (B, N, C). Matches Attention.forward (eval, prompt=None)."""
    B, N, C = x.shape
    H = params["num_heads"]
    D = C // H
    scale = float(qk_scale) if qk_scale is not None else D ** (-0.5)
    has_qkv_bias = params["b_qkv"] is not None

    kernel = functools.partial(_fused_attn_kernel, num_heads=H, scale=scale,
                               has_qkv_bias=has_qkv_bias)

    args = [x, params["w_qkv"]]
    if has_qkv_bias:
        args.append(params["b_qkv"])
    args += [params["w_proj"], params["b_proj"]]

    def _call(single_buffer_weights):
        # Grid-invariant blocks: constant index_map keeps them VMEM-resident
        # across the serial batch loop; Buffered(1) drops their (useless)
        # double buffer to free VMEM headroom (matters at real ViT dims / v7x).
        kw = ({"pipeline_mode": pl.Buffered(1)}
              if single_buffer_weights else {})

        def _resident(shape):
            return pl.BlockSpec(shape, lambda b: (0,) * len(shape), **kw)

        in_specs = [pl.BlockSpec((None, N, C), lambda b: (b, 0, 0)),
                    _resident((C, 3 * C))]
        if has_qkv_bias:
            in_specs.append(_resident((1, 3 * C)))
        in_specs += [_resident((C, C)), _resident((1, C))]

        return pl.pallas_call(
            kernel,
            out_shape=jax.ShapeDtypeStruct((B, N, C), x.dtype),
            grid=(B,),
            in_specs=in_specs,
            out_specs=pl.BlockSpec((None, N, C), lambda b: (b, 0, 0)),
            compiler_params=pltpu.CompilerParams(
                # batch steps are independent -> megacore / both v7x TensorCores
                dimension_semantics=("parallel",),
                vmem_limit_bytes=_vmem_limit_bytes()),
        )(*args)

    try:
        return _call(True)
    except Exception:
        # pipeline_mode=pl.Buffered(1) unsupported on this JAX version/backend;
        # fall back to default (double-buffered) weight blocks.
        return _call(False)


# ------------------------------ Reference (JAX) ------------------------------

def attention_reference(params, x, qk_scale=None):
    B, N, C = x.shape
    H = params["num_heads"]
    D = C // H
    scale = qk_scale if qk_scale is not None else D ** (-0.5)
    hi = jax.lax.Precision.HIGHEST
    w_qkv = params["w_qkv"].astype(jnp.float32)
    w_proj = params["w_proj"].astype(jnp.float32)
    qkv = jnp.einsum("bnc,cd->bnd", x.astype(jnp.float32), w_qkv, precision=hi)
    if params["b_qkv"] is not None:
        qkv = qkv + params["b_qkv"]
    q, k, v = jnp.split(qkv, 3, axis=-1)
    q = q.reshape(B, N, H, D).transpose(0, 2, 1, 3)
    k = k.reshape(B, N, H, D).transpose(0, 2, 1, 3)
    v = v.reshape(B, N, H, D).transpose(0, 2, 1, 3)
    attn = jnp.einsum("bhnd,bhmd->bhnm", q, k, precision=hi) * scale
    attn = jax.nn.softmax(attn, axis=-1)
    o = jnp.einsum("bhnm,bhmd->bhnd", attn, v, precision=hi)
    o = o.transpose(0, 2, 1, 3).reshape(B, N, C)
    return jnp.einsum("bnc,cd->bnd", o, w_proj, precision=hi) + params["b_proj"]


# ---------------------------------- Main -------------------------------------

if __name__ == "__main__":
    key = jax.random.PRNGKey(0)
    k_p32, k_pbf, k_pbf_b, k_x = jax.random.split(key, 4)

    B, N, C = 2, 8, 32          # batch, tokens, embed dim
    num_heads = 8               # head_dim = 4

    x = jax.random.normal(k_x, (B, N, C), jnp.float32)

    # 1) exact-algorithm check: f32 MXU inputs, qkv_bias=True
    p32 = init_attention_params(k_p32, dim=C, num_heads=num_heads,
                                qkv_bias=True, mxu_dtype=jnp.float32)
    out32 = jax.block_until_ready(attention_forward(p32, x))
    assert out32.shape == (B, N, C)
    ref32 = attention_reference(p32, x)
    assert jnp.allclose(out32, ref32, atol=1e-3, rtol=1e-3), "mismatch (f32)"

    # 2) fast path: bf16 MXU inputs + f32 accumulation, qkv_bias=False (default)
    pbf = init_attention_params(k_pbf, dim=C, num_heads=num_heads,
                                qkv_bias=False)
    outbf = jax.block_until_ready(attention_forward(pbf, x))
    refbf = attention_reference(pbf, x)
    assert jnp.allclose(outbf, refbf, atol=2e-2, rtol=2e-2), \
        "mismatch (bf16, qkv_bias=False)"

    # 3) fast path with qkv_bias=True
    pbf_b = init_attention_params(k_pbf_b, dim=C, num_heads=num_heads,
                                  qkv_bias=True)
    outbf_b = jax.block_until_ready(attention_forward(pbf_b, x))
    refbf_b = attention_reference(pbf_b, x)
    assert jnp.allclose(outbf_b, refbf_b, atol=2e-2, rtol=2e-2), \
        "mismatch (bf16, qkv_bias=True)"

    print("KERNEL_OK")
</pallas_src>

<mosaic_0001>
module attributes {stable_mosaic.version = 11 : i64} {
  func.func @_fused_attn_kernel(%arg0: i32, %arg1: memref<1x8x32xf32, #tpu.memory_space<vmem>>, %arg2: memref<32x96xf32, #tpu.memory_space<vmem>>, %arg3: memref<1x96xf32, #tpu.memory_space<vmem>>, %arg4: memref<32x32xf32, #tpu.memory_space<vmem>>, %arg5: memref<1x32xf32, #tpu.memory_space<vmem>>, %arg6: memref<1x8x32xf32, #tpu.memory_space<vmem>>) attributes {dimension_semantics = [#tpu.dimension_semantics<parallel>], iteration_bounds = array<i64: 2>, scalar_prefetch = 0 : i64, scratch_operands = 0 : i64, tpu.core_type = #tpu.core_type<tc>, window_params = [{transform_indices = @transform_0, window_bounds = array<i64: 1, 8, 32>}, {pipeline_mode = #tpu.pipeline_mode<synchronous>, transform_indices = @transform_1, window_bounds = array<i64: 32, 96>}, {pipeline_mode = #tpu.pipeline_mode<synchronous>, transform_indices = @transform_2, window_bounds = array<i64: 1, 96>}, {pipeline_mode = #tpu.pipeline_mode<synchronous>, transform_indices = @transform_3, window_bounds = array<i64: 32, 32>}, {pipeline_mode = #tpu.pipeline_mode<synchronous>, transform_indices = @transform_4, window_bounds = array<i64: 1, 32>}, {transform_indices = @transform_5, window_bounds = array<i64: 1, 8, 32>}]} {
    %c0 = arith.constant 0 : index
    %c0_0 = arith.constant 0 : index
    %c0_1 = arith.constant 0 : index
    %0 = vector.load %arg1[%c0, %c0_0, %c0_1] : memref<1x8x32xf32, #tpu.memory_space<vmem>>, vector<1x8x32xf32>
    %1 = vector.shape_cast %0 : vector<1x8x32xf32> to vector<8x32xf32>
    %c0_2 = arith.constant 0 : index
    %c0_3 = arith.constant 0 : index
    %2 = vector.load %arg2[%c0_2, %c0_3] : memref<32x96xf32, #tpu.memory_space<vmem>>, vector<32x96xf32>
    %cst = arith.constant dense<0.000000e+00> : vector<8x96xf32>
    %3 = tpu.matmul %1, %2, %cst {dimension_numbers = #tpu.dot_dimension_numbers<[1], [0], [0], [1], [0, 0, 1, 1], [], []>} : vector<8x32xf32>, vector<32x96xf32>, vector<8x96xf32> -> vector<8x96xf32>
    %c0_4 = arith.constant 0 : index
    %c0_5 = arith.constant 0 : index
    %4 = vector.load %arg3[%c0_4, %c0_5] : memref<1x96xf32, #tpu.memory_space<vmem>>, vector<1x96xf32>
    %5 = vector.broadcast %4 : vector<1x96xf32> to vector<8x96xf32>
    %6 = arith.addf %3, %5 : vector<8x96xf32>
    %7 = vector.extract_strided_slice %6 {offsets = [0, 0], sizes = [8, 32], strides = [1, 1]} : vector<8x96xf32> to vector<8x32xf32>
    %cst_6 = arith.constant 5.000000e-01 : f32
    %8 = vector.broadcast %cst_6 : f32 to vector<8x32xf32>
    %9 = arith.mulf %7, %8 : vector<8x32xf32>
    %10 = vector.extract_strided_slice %6 {offsets = [0, 32], sizes = [8, 32], strides = [1, 1]} : vector<8x96xf32> to vector<8x32xf32>
    %11 = vector.extract_strided_slice %6 {offsets = [0, 64], sizes = [8, 32], strides = [1, 1]} : vector<8x96xf32> to vector<8x32xf32>
    %c0_7 = arith.constant 0 : index
    %c0_8 = arith.constant 0 : index
    %12 = vector.load %arg4[%c0_7, %c0_8] : memref<32x32xf32, #tpu.memory_space<vmem>>, vector<32x32xf32>
    %cst_9 = arith.constant 0.000000e+00 : f32
    %13 = vector.broadcast %cst_9 : f32 to vector<8x32xf32>
    %14 = vector.extract_strided_slice %9 {offsets = [0, 0], sizes = [8, 4], strides = [1, 1]} : vector<8x32xf32> to vector<8x4xf32>
    %15 = vector.extract_strided_slice %10 {offsets = [0, 0], sizes = [8, 4], strides = [1, 1]} : vector<8x32xf32> to vector<8x4xf32>
    %16 = vector.extract_strided_slice %11 {offsets = [0, 0], sizes = [8, 4], strides = [1, 1]} : vector<8x32xf32> to vector<8x4xf32>
    %cst_10 = arith.constant dense<0.000000e+00> : vector<8x8xf32>
    %17 = tpu.matmul %14, %15, %cst_10 {dimension_numbers = #tpu.dot_dimension_numbers<[1], [1], [0], [0], [0, 0, 1, 0], [], []>} : vector<8x4xf32>, vector<8x4xf32>, vector<8x8xf32> -> vector<8x8xf32>
    %cst_11 = arith.constant dense<0xFF800000> : vector<8xf32>
    %18 = vector.multi_reduction <maximumf>, %17, %cst_11 [1] : vector<8x8xf32> to vector<8xf32>
    %19 = vector.shape_cast %18 : vector<8xf32> to vector<8x1xf32>
    %20 = vector.broadcast %19 : vector<8x1xf32> to vector<8x8xf32>
    %21 = arith.subf %17, %20 : vector<8x8xf32>
    %22 = math.exp %21 : vector<8x8xf32>
    %cst_12 = arith.constant dense<0.000000e+00> : vector<8xf32>
    %23 = vector.multi_reduction <add>, %22, %cst_12 [1] : vector<8x8xf32> to vector<8xf32>
    %24 = vector.shape_cast %23 : vector<8xf32> to vector<8x1xf32>
    %cst_13 = arith.constant 1.000000e+00 : f32
    %25 = vector.broadcast %cst_13 : f32 to vector<8x1xf32>
    %26 = arith.divf %25, %24 : vector<8x1xf32>
    %cst_14 = arith.constant dense<0.000000e+00> : vector<8x4xf32>
    %27 = tpu.matmul %22, %16, %cst_14 {dimension_numbers = #tpu.dot_dimension_numbers<[1], [0], [0], [1], [0, 0, 1, 1], [], []>} : vector<8x8xf32>, vector<8x4xf32>, vector<8x4xf32> -> vector<8x4xf32>
    %28 = vector.broadcast %26 : vector<8x1xf32> to vector<8x4xf32>
    %29 = arith.mulf %27, %28 : vector<8x4xf32>
    %30 = vector.extract_strided_slice %12 {offsets = [0, 0], sizes = [4, 32], strides = [1, 1]} : vector<32x32xf32> to vector<4x32xf32>
    %cst_15 = arith.constant dense<0.000000e+00> : vector<8x32xf32>
    %31 = tpu.matmul %29, %30, %cst_15 {dimension_numbers = #tpu.dot_dimension_numbers<[1], [0], [0], [1], [0, 0, 1, 1], [], []>} : vector<8x4xf32>, vector<4x32xf32>, vector<8x32xf32> -> vector<8x32xf32>
    %32 = arith.addf %13, %31 : vector<8x32xf32>
    %33 = vector.extract_strided_slice %9 {offsets = [0, 4], sizes = [8, 4], strides = [1, 1]} : vector<8x32xf32> to vector<8x4xf32>
    %34 = vector.extract_strided_slice %10 {offsets = [0, 4], sizes = [8, 4], strides = [1, 1]} : vector<8x32xf32> to vector<8x4xf32>
    %35 = vector.extract_strided_slice %11 {offsets = [0, 4], sizes = [8, 4], strides = [1, 1]} : vector<8x32xf32> to vector<8x4xf32>
    %cst_16 = arith.constant dense<0.000000e+00> : vector<8x8xf32>
    %36 = tpu.matmul %33, %34, %cst_16 {dimension_numbers = #tpu.dot_dimension_numbers<[1], [1], [0], [0], [0, 0, 1, 0], [], []>} : vector<8x4xf32>, vector<8x4xf32>, vector<8x8xf32> -> vector<8x8xf32>
    %cst_17 = arith.constant dense<0xFF800000> : vector<8xf32>
    %37 = vector.multi_reduction <maximumf>, %36, %cst_17 [1] : vector<8x8xf32> to vector<8xf32>
    %38 = vector.shape_cast %37 : vector<8xf32> to vector<8x1xf32>
    %39 = vector.broadcast %38 : vector<8x1xf32> to vector<8x8xf32>
    %40 = arith.subf %36, %39 : vector<8x8xf32>
    %41 = math.exp %40 : vector<8x8xf32>
    %cst_18 = arith.constant dense<0.000000e+00> : vector<8xf32>
    %42 = vector.multi_reduction <add>, %41, %cst_18 [1] : vector<8x8xf32> to vector<8xf32>
    %43 = vector.shape_cast %42 : vector<8xf32> to vector<8x1xf32>
    %cst_19 = arith.constant 1.000000e+00 : f32
    %44 = vector.broadcast %cst_19 : f32 to vector<8x1xf32>
    %45 = arith.divf %44, %43 : vector<8x1xf32>
    %cst_20 = arith.constant dense<0.000000e+00> : vector<8x4xf32>
    %46 = tpu.matmul %41, %35, %cst_20 {dimension_numbers = #tpu.dot_dimension_numbers<[1], [0], [0], [1], [0, 0, 1, 1], [], []>} : vector<8x8xf32>, vector<8x4xf32>, vector<8x4xf32> -> vector<8x4xf32>
    %47 = vector.broadcast %45 : vector<8x1xf32> to vector<8x4xf32>
    %48 = arith.mulf %46, %47 : vector<8x4xf32>
    %49 = vector.extract_strided_slice %12 {offsets = [4, 0], sizes = [4, 32], strides = [1, 1]} : vector<32x32xf32> to vector<4x32xf32>
    %cst_21 = arith.constant dense<0.000000e+00> : vector<8x32xf32>
    %50 = tpu.matmul %48, %49, %cst_21 {dimension_numbers = #tpu.dot_dimension_numbers<[1], [0], [0], [1], [0, 0, 1, 1], [], []>} : vector<8x4xf32>, vector<4x32xf32>, vector<8x32xf32> -> vector<8x32xf32>
    %51 = arith.addf %32, %50 : vector<8x32xf32>
    %52 = vector.extract_strided_slice %9 {offsets = [0, 8], sizes = [8, 4], strides = [1, 1]} : vector<8x32xf32> to vector<8x4xf32>
    %53 = vector.extract_strided_slice %10 {offsets = [0, 8], sizes = [8, 4], strides = [1, 1]} : vector<8x32xf32> to vector<8x4xf32>
    %54 = vector.extract_strided_slice %11 {offsets = [0, 8], sizes = [8, 4], strides = [1, 1]} : vector<8x32xf32> to vector<8x4xf32>
    %cst_22 = arith.constant dense<0.000000e+00> : vector<8x8xf32>
    %55 = tpu.matmul %52, %53, %cst_22 {dimension_numbers = #tpu.dot_dimension_numbers<[1], [1], [0], [0], [0, 0, 1, 0], [], []>} : vector<8x4xf32>, vector<8x4xf32>, vector<8x8xf32> -> vector<8x8xf32>
    %cst_23 = arith.constant dense<0xFF800000> : vector<8xf32>
    %56 = vector.multi_reduction <maximumf>, %55, %cst_23 [1] : vector<8x8xf32> to vector<8xf32>
    %57 = vector.shape_cast %56 : vector<8xf32> to vector<8x1xf32>
    %58 = vector.broadcast %57 : vector<8x1xf32> to vector<8x8xf32>
    %59 = arith.subf %55, %58 : vector<8x8xf32>
    %60 = math.exp %59 : vector<8x8xf32>
    %cst_24 = arith.constant dense<0.000000e+00> : vector<8xf32>
    %61 = vector.multi_reduction <add>, %60, %cst_24 [1] : vector<8x8xf32> to vector<8xf32>
    %62 = vector.shape_cast %61 : vector<8xf32> to vector<8x1xf32>
    %cst_25 = arith.constant 1.000000e+00 : f32
    %63 = vector.broadcast %cst_25 : f32 to vector<8x1xf32>
    %64 = arith.divf %63, %62 : vector<8x1xf32>
    %cst_26 = arith.constant dense<0.000000e+00> : vector<8x4xf32>
    %65 = tpu.matmul %60, %54, %cst_26 {dimension_numbers = #tpu.dot_dimension_numbers<[1], [0], [0], [1], [0, 0, 1, 1], [], []>} : vector<8x8xf32>, vector<8x4xf32>, vector<8x4xf32> -> vector<8x4xf32>
    %66 = vector.broadcast %64 : vector<8x1xf32> to vector<8x4xf32>
    %67 = arith.mulf %65, %66 : vector<8x4xf32>
    %68 = vector.extract_strided_slice %12 {offsets = [8, 0], sizes = [4, 32], strides = [1, 1]} : vector<32x32xf32> to vector<4x32xf32>
    %cst_27 = arith.constant dense<0.000000e+00> : vector<8x32xf32>
    %69 = tpu.matmul %67, %68, %cst_27 {dimension_numbers = #tpu.dot_dimension_numbers<[1], [0], [0], [1], [0, 0, 1, 1], [], []>} : vector<8x4xf32>, vector<4x32xf32>, vector<8x32xf32> -> vector<8x32xf32>
    %70 = arith.addf %51, %69 : vector<8x32xf32>
    %71 = vector.extract_strided_slice %9 {offsets = [0, 12], sizes = [8, 4], strides = [1, 1]} : vector<8x32xf32> to vector<8x4xf32>
    %72 = vector.extract_strided_slice %10 {offsets = [0, 12], sizes = [8, 4], strides = [1, 1]} : vector<8x32xf32> to vector<8x4xf32>
    %73 = vector.extract_strided_slice %11 {offsets = [0, 12], sizes = [8, 4], strides = [1, 1]} : vector<8x32xf32> to vector<8x4xf32>
    %cst_28 = arith.constant dense<0.000000e+00> : vector<8x8xf32>
    %74 = tpu.matmul %71, %72, %cst_28 {dimension_numbers = #tpu.dot_dimension_numbers<[1], [1], [0], [0], [0, 0, 1, 0], [], []>} : vector<8x4xf32>, vector<8x4xf32>, vector<8x8xf32> -> vector<8x8xf32>
    %cst_29 = arith.constant dense<0xFF800000> : vector<8xf32>
    %75 = vector.multi_reduction <maximumf>, %74, %cst_29 [1] : vector<8x8xf32> to vector<8xf32>
    %76 = vector.shape_cast %75 : vector<8xf32> to vector<8x1xf32>
    %77 = vector.broadcast %76 : vector<8x1xf32> to vector<8x8xf32>
    %78 = arith.subf %74, %77 : vector<8x8xf32>
    %79 = math.exp %78 : vector<8x8xf32>
    %cst_30 = arith.constant dense<0.000000e+00> : vector<8xf32>
    %80 = vector.multi_reduction <add>, %79, %cst_30 [1] : vector<8x8xf32> to vector<8xf32>
    %81 = vector.shape_cast %80 : vector<8xf32> to vector<8x1xf32>
    %cst_31 = arith.constant 1.000000e+00 : f32
    %82 = vector.broadcast %cst_31 : f32 to vector<8x1xf32>
    %83 = arith.divf %82, %81 : vector<8x1xf32>
    %cst_32 = arith.constant dense<0.000000e+00> : vector<8x4xf32>
    %84 = tpu.matmul %79, %73, %cst_32 {dimension_numbers = #tpu.dot_dimension_numbers<[1], [0], [0], [1], [0, 0, 1, 1], [], []>} : vector<8x8xf32>, vector<8x4xf32>, vector<8x4xf32> -> vector<8x4xf32>
    %85 = vector.broadcast %83 : vector<8x1xf32> to vector<8x4xf32>
    %86 = arith.mulf %84, %85 : vector<8x4xf32>
    %87 = vector.extract_strided_slice %12 {offsets = [12, 0], sizes = [4, 32], strides = [1, 1]} : vector<32x32xf32> to vector<4x32xf32>
    %cst_33 = arith.constant dense<0.000000e+00> : vector<8x32xf32>
    %88 = tpu.matmul %86, %87, %cst_33 {dimension_numbers = #tpu.dot_dimension_numbers<[1], [0], [0], [1], [0, 0, 1, 1], [], []>} : vector<8x4xf32>, vector<4x32xf32>, vector<8x32xf32> -> vector<8x32xf32>
    %89 = arith.addf %70, %88 : vector<8x32xf32>
    %90 = vector.extract_strided_slice %9 {offsets = [0, 16], sizes = [8, 4], strides = [1, 1]} : vector<8x32xf32> to vector<8x4xf32>
    %91 = vector.extract_strided_slice %10 {offsets = [0, 16], sizes = [8, 4], strides = [1, 1]} : vector<8x32xf32> to vector<8x4xf32>
    %92 = vector.extract_strided_slice %11 {offsets = [0, 16], sizes = [8, 4], strides = [1, 1]} : vector<8x32xf32> to vector<8x4xf32>
    %cst_34 = arith.constant dense<0.000000e+00> : vector<8x8xf32>
    %93 = tpu.matmul %90, %91, %cst_34 {dimension_numbers = #tpu.dot_dimension_numbers<[1], [1], [0], [0], [0, 0, 1, 0], [], []>} : vector<8x4xf32>, vector<8x4xf32>, vector<8x8xf32> -> vector<8x8xf32>
    %cst_35 = arith.constant dense<0xFF800000> : vector<8xf32>
    %94 = vector.multi_reduction <maximumf>, %93, %cst_35 [1] : vector<8x8xf32> to vector<8xf32>
    %95 = vector.shape_cast %94 : vector<8xf32> to vector<8x1xf32>
    %96 = vector.broadcast %95 : vector<8x1xf32> to vector<8x8xf32>
    %97 = arith.subf %93, %96 : vector<8x8xf32>
    %98 = math.exp %97 : vector<8x8xf32>
    %cst_36 = arith.constant dense<0.000000e+00> : vector<8xf32>
    %99 = vector.multi_reduction <add>, %98, %cst_36 [1] : vector<8x8xf32> to vector<8xf32>
    %100 = vector.shape_cast %99 : vector<8xf32> to vector<8x1xf32>
    %cst_37 = arith.constant 1.000000e+00 : f32
    %101 = vector.broadcast %cst_37 : f32 to vector<8x1xf32>
    %102 = arith.divf %101, %100 : vector<8x1xf32>
    %cst_38 = arith.constant dense<0.000000e+00> : vector<8x4xf32>
    %103 = tpu.matmul %98, %92, %cst_38 {dimension_numbers = #tpu.dot_dimension_numbers<[1], [0], [0], [1], [0, 0, 1, 1], [], []>} : vector<8x8xf32>, vector<8x4xf32>, vector<8x4xf32> -> vector<8x4xf32>
    %104 = vector.broadcast %102 : vector<8x1xf32> to vector<8x4xf32>
    %105 = arith.mulf %103, %104 : vector<8x4xf32>
    %106 = vector.extract_strided_slice %12 {offsets = [16, 0], sizes = [4, 32], strides = [1, 1]} : vector<32x32xf32> to vector<4x32xf32>
    %cst_39 = arith.constant dense<0.000000e+00> : vector<8x32xf32>
    %107 = tpu.matmul %105, %106, %cst_39 {dimension_numbers = #tpu.dot_dimension_numbers<[1], [0], [0], [1], [0, 0, 1, 1], [], []>} : vector<8x4xf32>, vector<4x32xf32>, vector<8x32xf32> -> vector<8x32xf32>
    %108 = arith.addf %89, %107 : vector<8x32xf32>
    %109 = vector.extract_strided_slice %9 {offsets = [0, 20], sizes = [8, 4], strides = [1, 1]} : vector<8x32xf32> to vector<8x4xf32>
    %110 = vector.extract_strided_slice %10 {offsets = [0, 20], sizes = [8, 4], strides = [1, 1]} : vector<8x32xf32> to vector<8x4xf32>
    %111 = vector.extract_strided_slice %11 {offsets = [0, 20], sizes = [8, 4], strides = [1, 1]} : vector<8x32xf32> to vector<8x4xf32>
    %cst_40 = arith.constant dense<0.000000e+00> : vector<8x8xf32>
    %112 = tpu.matmul %109, %110, %cst_40 {dimension_numbers = #tpu.dot_dimension_numbers<[1], [1], [0], [0], [0, 0, 1, 0], [], []>} : vector<8x4xf32>, vector<8x4xf32>, vector<8x8xf32> -> vector<8x8xf32>
    %cst_41 = arith.constant dense<0xFF800000> : vector<8xf32>
    %113 = vector.multi_reduction <maximumf>, %112, %cst_41 [1] : vector<8x8xf32> to vector<8xf32>
    %114 = vector.shape_cast %113 : vector<8xf32> to vector<8x1xf32>
    %115 = vector.broadcast %114 : vector<8x1xf32> to vector<8x8xf32>
    %116 = arith.subf %112, %115 : vector<8x8xf32>
    %117 = math.exp %116 : vector<8x8xf32>
    %cst_42 = arith.constant dense<0.000000e+00> : vector<8xf32>
    %118 = vector.multi_reduction <add>, %117, %cst_42 [1] : vector<8x8xf32> to vector<8xf32>
    %119 = vector.shape_cast %118 : vector<8xf32> to vector<8x1xf32>
    %cst_43 = arith.constant 1.000000e+00 : f32
    %120 = vector.broadcast %cst_43 : f32 to vector<8x1xf32>
    %121 = arith.divf %120, %119 : vector<8x1xf32>
    %cst_44 = arith.constant dense<0.000000e+00> : vector<8x4xf32>
    %122 = tpu.matmul %117, %111, %cst_44 {dimension_numbers = #tpu.dot_dimension_numbers<[1], [0], [0], [1], [0, 0, 1, 1], [], []>} : vector<8x8xf32>, vector<8x4xf32>, vector<8x4xf32> -> vector<8x4xf32>
    %123 = vector.broadcast %121 : vector<8x1xf32> to vector<8x4xf32>
    %124 = arith.mulf %122, %123 : vector<8x4xf32>
    %125 = vector.extract_strided_slice %12 {offsets = [20, 0], sizes = [4, 32], strides = [1, 1]} : vector<32x32xf32> to vector<4x32xf32>
    %cst_45 = arith.constant dense<0.000000e+00> : vector<8x32xf32>
    %126 = tpu.matmul %124, %125, %cst_45 {dimension_numbers = #tpu.dot_dimension_numbers<[1], [0], [0], [1], [0, 0, 1, 1], [], []>} : vector<8x4xf32>, vector<4x32xf32>, vector<8x32xf32> -> vector<8x32xf32>
    %127 = arith.addf %108, %126 : vector<8x32xf32>
    %128 = vector.extract_strided_slice %9 {offsets = [0, 24], sizes = [8, 4], strides = [1, 1]} : vector<8x32xf32> to vector<8x4xf32>
    %129 = vector.extract_strided_slice %10 {offsets = [0, 24], sizes = [8, 4], strides = [1, 1]} : vector<8x32xf32> to vector<8x4xf32>
    %130 = vector.extract_strided_slice %11 {offsets = [0, 24], sizes = [8, 4], strides = [1, 1]} : vector<8x32xf32> to vector<8x4xf32>
    %cst_46 = arith.constant dense<0.000000e+00> : vector<8x8xf32>
    %131 = tpu.matmul %128, %129, %cst_46 {dimension_numbers = #tpu.dot_dimension_numbers<[1], [1], [0], [0], [0, 0, 1, 0], [], []>} : vector<8x4xf32>, vector<8x4xf32>, vector<8x8xf32> -> vector<8x8xf32>
    %cst_47 = arith.constant dense<0xFF800000> : vector<8xf32>
    %132 = vector.multi_reduction <maximumf>, %131, %cst_47 [1] : vector<8x8xf32> to vector<8xf32>
    %133 = vector.shape_cast %132 : vector<8xf32> to vector<8x1xf32>
    %134 = vector.broadcast %133 : vector<8x1xf32> to vector<8x8xf32>
    %135 = arith.subf %131, %134 : vector<8x8xf32>
    %136 = math.exp %135 : vector<8x8xf32>
    %cst_48 = arith.constant dense<0.000000e+00> : vector<8xf32>
    %137 = vector.multi_reduction <add>, %136, %cst_48 [1] : vector<8x8xf32> to vector<8xf32>
    %138 = vector.shape_cast %137 : vector<8xf32> to vector<8x1xf32>
    %cst_49 = arith.constant 1.000000e+00 : f32
    %139 = vector.broadcast %cst_49 : f32 to vector<8x1xf32>
    %140 = arith.divf %139, %138 : vector<8x1xf32>
    %cst_50 = arith.constant dense<0.000000e+00> : vector<8x4xf32>
    %141 = tpu.matmul %136, %130, %cst_50 {dimension_numbers = #tpu.dot_dimension_numbers<[1], [0], [0], [1], [0, 0, 1, 1], [], []>} : vector<8x8xf32>, vector<8x4xf32>, vector<8x4xf32> -> vector<8x4xf32>
    %142 = vector.broadcast %140 : vector<8x1xf32> to vector<8x4xf32>
    %143 = arith.mulf %141, %142 : vector<8x4xf32>
    %144 = vector.extract_strided_slice %12 {offsets = [24, 0], sizes = [4, 32], strides = [1, 1]} : vector<32x32xf32> to vector<4x32xf32>
    %cst_51 = arith.constant dense<0.000000e+00> : vector<8x32xf32>
    %145 = tpu.matmul %143, %144, %cst_51 {dimension_numbers = #tpu.dot_dimension_numbers<[1], [0], [0], [1], [0, 0, 1, 1], [], []>} : vector<8x4xf32>, vector<4x32xf32>, vector<8x32xf32> -> vector<8x32xf32>
    %146 = arith.addf %127, %145 : vector<8x32xf32>
    %147 = vector.extract_strided_slice %9 {offsets = [0, 28], sizes = [8, 4], strides = [1, 1]} : vector<8x32xf32> to vector<8x4xf32>
    %148 = vector.extract_strided_slice %10 {offsets = [0, 28], sizes = [8, 4], strides = [1, 1]} : vector<8x32xf32> to vector<8x4xf32>
    %149 = vector.extract_strided_slice %11 {offsets = [0, 28], sizes = [8, 4], strides = [1, 1]} : vector<8x32xf32> to vector<8x4xf32>
    %cst_52 = arith.constant dense<0.000000e+00> : vector<8x8xf32>
    %150 = tpu.matmul %147, %148, %cst_52 {dimension_numbers = #tpu.dot_dimension_numbers<[1], [1], [0], [0], [0, 0, 1, 0], [], []>} : vector<8x4xf32>, vector<8x4xf32>, vector<8x8xf32> -> vector<8x8xf32>
    %cst_53 = arith.constant dense<0xFF800000> : vector<8xf32>
    %151 = vector.multi_reduction <maximumf>, %150, %cst_53 [1] : vector<8x8xf32> to vector<8xf32>
    %152 = vector.shape_cast %151 : vector<8xf32> to vector<8x1xf32>
    %153 = vector.broadcast %152 : vector<8x1xf32> to vector<8x8xf32>
    %154 = arith.subf %150, %153 : vector<8x8xf32>
    %155 = math.exp %154 : vector<8x8xf32>
    %cst_54 = arith.constant dense<0.000000e+00> : vector<8xf32>
    %156 = vector.multi_reduction <add>, %155, %cst_54 [1] : vector<8x8xf32> to vector<8xf32>
    %157 = vector.shape_cast %156 : vector<8xf32> to vector<8x1xf32>
    %cst_55 = arith.constant 1.000000e+00 : f32
    %158 = vector.broadcast %cst_55 : f32 to vector<8x1xf32>
    %159 = arith.divf %158, %157 : vector<8x1xf32>
    %cst_56 = arith.constant dense<0.000000e+00> : vector<8x4xf32>
    %160 = tpu.matmul %155, %149, %cst_56 {dimension_numbers = #tpu.dot_dimension_numbers<[1], [0], [0], [1], [0, 0, 1, 1], [], []>} : vector<8x8xf32>, vector<8x4xf32>, vector<8x4xf32> -> vector<8x4xf32>
    %161 = vector.broadcast %159 : vector<8x1xf32> to vector<8x4xf32>
    %162 = arith.mulf %160, %161 : vector<8x4xf32>
    %163 = vector.extract_strided_slice %12 {offsets = [28, 0], sizes = [4, 32], strides = [1, 1]} : vector<32x32xf32> to vector<4x32xf32>
    %cst_57 = arith.constant dense<0.000000e+00> : vector<8x32xf32>
    %164 = tpu.matmul %162, %163, %cst_57 {dimension_numbers = #tpu.dot_dimension_numbers<[1], [0], [0], [1], [0, 0, 1, 1], [], []>} : vector<8x4xf32>, vector<4x32xf32>, vector<8x32xf32> -> vector<8x32xf32>
    %165 = arith.addf %146, %164 : vector<8x32xf32>
    %c0_58 = arith.constant 0 : index
    %c0_59 = arith.constant 0 : index
    %166 = vector.load %arg5[%c0_58, %c0_59] : memref<1x32xf32, #tpu.memory_space<vmem>>, vector<1x32xf32>
    %167 = vector.broadcast %166 : vector<1x32xf32> to vector<8x32xf32>
    %168 = arith.addf %165, %167 : vector<8x32xf32>
    %c0_60 = arith.constant 0 : index
    %c0_61 = arith.constant 0 : index
    %c0_62 = arith.constant 0 : index
    %169 = vector.load %arg6[%c0_60, %c0_61, %c0_62] : memref<1x8x32xf32, #tpu.memory_space<vmem>>, vector<1x8x32xf32>
    %170 = vector.shape_cast %169 : vector<1x8x32xf32> to vector<8x32xf32>
    %171 = vector.shape_cast %168 : vector<8x32xf32> to vector<1x8x32xf32>
    tpu.vector_store %arg6[%c0_60, %c0_61, %c0_62], %171 {strides = array<i32>} : memref<1x8x32xf32, #tpu.memory_space<vmem>>, vector<1x8x32xf32>,
    return
  }
  func.func @transform_0(%arg0: i32) -> (i32, i32, i32) {
    %c0_i32 = arith.constant 0 : i32
    %c0_i32_0 = arith.constant 0 : i32
    %c0_i32_1 = arith.constant 0 : i32
    return %arg0, %c0_i32, %c0_i32_0 : i32, i32, i32
  }
  func.func @transform_1(%arg0: i32) -> (i32, i32) {
    %c0_i32 = arith.constant 0 : i32
    %c0_i32_0 = arith.constant 0 : i32
    %c0_i32_1 = arith.constant 0 : i32
    return %c0_i32, %c0_i32_0 : i32, i32
  }
  func.func @transform_2(%arg0: i32) -> (i32, i32) {
    %c0_i32 = arith.constant 0 : i32
    %c0_i32_0 = arith.constant 0 : i32
    %c0_i32_1 = arith.constant 0 : i32
    return %c0_i32, %c0_i32_0 : i32, i32
  }
  func.func @transform_3(%arg0: i32) -> (i32, i32) {
    %c0_i32 = arith.constant 0 : i32
    %c0_i32_0 = arith.constant 0 : i32
    %c0_i32_1 = arith.constant 0 : i32
    return %c0_i32, %c0_i32_0 : i32, i32
  }
  func.func @transform_4(%arg0: i32) -> (i32, i32) {
    %c0_i32 = arith.constant 0 : i32
    %c0_i32_0 = arith.constant 0 : i32
    %c0_i32_1 = arith.constant 0 : i32
    return %c0_i32, %c0_i32_0 : i32, i32
  }
  func.func @transform_5(%arg0: i32) -> (i32, i32, i32) {
    %c0_i32 = arith.constant 0 : i32
    %c0_i32_0 = arith.constant 0 : i32
    %c0_i32_1 = arith.constant 0 : i32
    return %arg0, %c0_i32, %c0_i32_0 : i32, i32, i32
  }
}

module attributes {stable_mosaic.version = 11 : i64} {
  func.func @_fused_attn_kernel(%arg0: i32, %arg1: memref<1x8x32xf32, #tpu.memory_space<vmem>>, %arg2: memref<32x96xf32, #tpu.memory_space<vmem>>, %arg3: memref<1x96xf32, #tpu.memory_space<vmem>>, %arg4: memref<32x32xf32, #tpu.memory_space<vmem>>, %arg5: memref<1x32xf32, #tpu.memory_space<vmem>>, %arg6: memref<1x8x32xf32, #tpu.memory_space<vmem>>) attributes {dimension_semantics = [#tpu.dimension_semantics<parallel>], iteration_bounds = array<i64: 2>, scalar_prefetch = 0 : i64, scratch_operands = 0 : i64, tpu.core_type = #tpu.core_type<tc>, window_params = [{transform_indices = @transform_0, window_bounds = array<i64: 1, 8, 32>}, {pipeline_mode = #tpu.pipeline_mode<synchronous>, transform_indices = @transform_1, window_bounds = array<i64: 32, 96>}, {pipeline_mode = #tpu.pipeline_mode<synchronous>, transform_indices = @transform_2, window_bounds = array<i64: 1, 96>}, {pipeline_mode = #tpu.pipeline_mode<synchronous>, transform_indices = @transform_3, window_bounds = array<i64: 32, 32>}, {pipeline_mode = #tpu.pipeline_mode<synchronous>, transform_indices = @transform_4, window_bounds = array<i64: 1, 32>}, {transform_indices = @transform_5, window_bounds = array<i64: 1, 8, 32>}]} {
    %c0 = arith.constant 0 : index
    %c0_0 = arith.constant 0 : index
    %c0_1 = arith.constant 0 : index
    %0 = vector.load %arg1[%c0, %c0_0, %c0_1] : memref<1x8x32xf32, #tpu.memory_space<vmem>>, vector<1x8x32xf32>
    %1 = vector.shape_cast %0 : vector<1x8x32xf32> to vector<8x32xf32>
    %c0_2 = arith.constant 0 : index
    %c0_3 = arith.constant 0 : index
    %2 = vector.load %arg2[%c0_2, %c0_3] : memref<32x96xf32, #tpu.memory_space<vmem>>, vector<32x96xf32>
    %cst = arith.constant dense<0.000000e+00> : vector<8x96xf32>
    %3 = tpu.matmul %1, %2, %cst {dimension_numbers = #tpu.dot_dimension_numbers<[1], [0], [0], [1], [0, 0, 1, 1], [], []>} : vector<8x32xf32>, vector<32x96xf32>, vector<8x96xf32> -> vector<8x96xf32>
    %c0_4 = arith.constant 0 : index
    %c0_5 = arith.constant 0 : index
    %4 = vector.load %arg3[%c0_4, %c0_5] : memref<1x96xf32, #tpu.memory_space<vmem>>, vector<1x96xf32>
    %5 = vector.broadcast %4 : vector<1x96xf32> to vector<8x96xf32>
    %6 = arith.addf %3, %5 : vector<8x96xf32>
    %7 = vector.extract_strided_slice %6 {offsets = [0, 0], sizes = [8, 32], strides = [1, 1]} : vector<8x96xf32> to vector<8x32xf32>
    %cst_6 = arith.constant 5.000000e-01 : f32
    %8 = vector.broadcast %cst_6 : f32 to vector<8x32xf32>
    %9 = arith.mulf %7, %8 : vector<8x32xf32>
    %10 = vector.extract_strided_slice %6 {offsets = [0, 32], sizes = [8, 32], strides = [1, 1]} : vector<8x96xf32> to vector<8x32xf32>
    %11 = vector.extract_strided_slice %6 {offsets = [0, 64], sizes = [8, 32], strides = [1, 1]} : vector<8x96xf32> to vector<8x32xf32>
    %c0_7 = arith.constant 0 : index
    %c0_8 = arith.constant 0 : index
    %12 = vector.load %arg4[%c0_7, %c0_8] : memref<32x32xf32, #tpu.memory_space<vmem>>, vector<32x32xf32>
    %cst_9 = arith.constant 0.000000e+00 : f32
    %13 = vector.broadcast %cst_9 : f32 to vector<8x32xf32>
    %14 = vector.extract_strided_slice %9 {offsets = [0, 0], sizes = [8, 4], strides = [1, 1]} : vector<8x32xf32> to vector<8x4xf32>
    %15 = vector.extract_strided_slice %10 {offsets = [0, 0], sizes = [8, 4], strides = [1, 1]} : vector<8x32xf32> to vector<8x4xf32>
    %16 = vector.extract_strided_slice %11 {offsets = [0, 0], sizes = [8, 4], strides = [1, 1]} : vector<8x32xf32> to vector<8x4xf32>
    %cst_10 = arith.constant dense<0.000000e+00> : vector<8x8xf32>
    %17 = tpu.matmul %14, %15, %cst_10 {dimension_numbers = #tpu.dot_dimension_numbers<[1], [1], [0], [0], [0, 0, 1, 0], [], []>} : vector<8x4xf32>, vector<8x4xf32>, vector<8x8xf32> -> vector<8x8xf32>
    %cst_11 = arith.constant dense<0xFF800000> : vector<8xf32>
    %18 = vector.multi_reduction <maximumf>, %17, %cst_11 [1] : vector<8x8xf32> to vector<8xf32>
    %19 = vector.shape_cast %18 : vector<8xf32> to vector<8x1xf32>
    %20 = vector.broadcast %19 : vector<8x1xf32> to vector<8x8xf32>
    %21 = arith.subf %17, %20 : vector<8x8xf32>
    %22 = math.exp %21 : vector<8x8xf32>
    %cst_12 = arith.constant dense<0.000000e+00> : vector<8xf32>
    %23 = vector.multi_reduction <add>, %22, %cst_12 [1] : vector<8x8xf32> to vector<8xf32>
    %24 = vector.shape_cast %23 : vector<8xf32> to vector<8x1xf32>
    %cst_13 = arith.constant 1.000000e+00 : f32
    %25 = vector.broadcast %cst_13 : f32 to vector<8x1xf32>
    %26 = arith.divf %25, %24 : vector<8x1xf32>
    %cst_14 = arith.constant dense<0.000000e+00> : vector<8x4xf32>
    %27 = tpu.matmul %22, %16, %cst_14 {dimension_numbers = #tpu.dot_dimension_numbers<[1], [0], [0], [1], [0, 0, 1, 1], [], []>} : vector<8x8xf32>, vector<8x4xf32>, vector<8x4xf32> -> vector<8x4xf32>
    %28 = vector.broadcast %26 : vector<8x1xf32> to vector<8x4xf32>
    %29 = arith.mulf %27, %28 : vector<8x4xf32>
    %30 = vector.extract_strided_slice %12 {offsets = [0, 0], sizes = [4, 32], strides = [1, 1]} : vector<32x32xf32> to vector<4x32xf32>
    %cst_15 = arith.constant dense<0.000000e+00> : vector<8x32xf32>
    %31 = tpu.matmul %29, %30, %cst_15 {dimension_numbers = #tpu.dot_dimension_numbers<[1], [0], [0], [1], [0, 0, 1, 1], [], []>} : vector<8x4xf32>, vector<4x32xf32>, vector<8x32xf32> -> vector<8x32xf32>
    %32 = arith.addf %13, %31 : vector<8x32xf32>
    %33 = vector.extract_strided_slice %9 {offsets = [0, 4], sizes = [8, 4], strides = [1, 1]} : vector<8x32xf32> to vector<8x4xf32>
    %34 = vector.extract_strided_slice %10 {offsets = [0, 4], sizes = [8, 4], strides = [1, 1]} : vector<8x32xf32> to vector<8x4xf32>
    %35 = vector.extract_strided_slice %11 {offsets = [0, 4], sizes = [8, 4], strides = [1, 1]} : vector<8x32xf32> to vector<8x4xf32>
    %cst_16 = arith.constant dense<0.000000e+00> : vector<8x8xf32>
    %36 = tpu.matmul %33, %34, %cst_16 {dimension_numbers = #tpu.dot_dimension_numbers<[1], [1], [0], [0], [0, 0, 1, 0], [], []>} : vector<8x4xf32>, vector<8x4xf32>, vector<8x8xf32> -> vector<8x8xf32>
    %cst_17 = arith.constant dense<0xFF800000> : vector<8xf32>
    %37 = vector.multi_reduction <maximumf>, %36, %cst_17 [1] : vector<8x8xf32> to vector<8xf32>
    %38 = vector.shape_cast %37 : vector<8xf32> to vector<8x1xf32>
    %39 = vector.broadcast %38 : vector<8x1xf32> to vector<8x8xf32>
    %40 = arith.subf %36, %39 : vector<8x8xf32>
    %41 = math.exp %40 : vector<8x8xf32>
    %cst_18 = arith.constant dense<0.000000e+00> : vector<8xf32>
    %42 = vector.multi_reduction <add>, %41, %cst_18 [1] : vector<8x8xf32> to vector<8xf32>
    %43 = vector.shape_cast %42 : vector<8xf32> to vector<8x1xf32>
    %cst_19 = arith.constant 1.000000e+00 : f32
    %44 = vector.broadcast %cst_19 : f32 to vector<8x1xf32>
    %45 = arith.divf %44, %43 : vector<8x1xf32>
    %cst_20 = arith.constant dense<0.000000e+00> : vector<8x4xf32>
    %46 = tpu.matmul %41, %35, %cst_20 {dimension_numbers = #tpu.dot_dimension_numbers<[1], [0], [0], [1], [0, 0, 1, 1], [], []>} : vector<8x8xf32>, vector<8x4xf32>, vector<8x4xf32> -> vector<8x4xf32>
    %47 = vector.broadcast %45 : vector<8x1xf32> to vector<8x4xf32>
    %48 = arith.mulf %46, %47 : vector<8x4xf32>
    %49 = vector.extract_strided_slice %12 {offsets = [4, 0], sizes = [4, 32], strides = [1, 1]} : vector<32x32xf32> to vector<4x32xf32>
    %cst_21 = arith.constant dense<0.000000e+00> : vector<8x32xf32>
    %50 = tpu.matmul %48, %49, %cst_21 {dimension_numbers = #tpu.dot_dimension_numbers<[1], [0], [0], [1], [0, 0, 1, 1], [], []>} : vector<8x4xf32>, vector<4x32xf32>, vector<8x32xf32> -> vector<8x32xf32>
    %51 = arith.addf %32, %50 : vector<8x32xf32>
    %52 = vector.extract_strided_slice %9 {offsets = [0, 8], sizes = [8, 4], strides = [1, 1]} : vector<8x32xf32> to vector<8x4xf32>
    %53 = vector.extract_strided_slice %10 {offsets = [0, 8], sizes = [8, 4], strides = [1, 1]} : vector<8x32xf32> to vector<8x4xf32>
    %54 = vector.extract_strided_slice %11 {offsets = [0, 8], sizes = [8, 4], strides = [1, 1]} : vector<8x32xf32> to vector<8x4xf32>
    %cst_22 = arith.constant dense<0.000000e+00> : vector<8x8xf32>
    %55 = tpu.matmul %52, %53, %cst_22 {dimension_numbers = #tpu.dot_dimension_numbers<[1], [1], [0], [0], [0, 0, 1, 0], [], []>} : vector<8x4xf32>, vector<8x4xf32>, vector<8x8xf32> -> vector<8x8xf32>
    %cst_23 = arith.constant dense<0xFF800000> : vector<8xf32>
    %56 = vector.multi_reduction <maximumf>, %55, %cst_23 [1] : vector<8x8xf32> to vector<8xf32>
    %57 = vector.shape_cast %56 : vector<8xf32> to vector<8x1xf32>
    %58 = vector.broadcast %57 : vector<8x1xf32> to vector<8x8xf32>
    %59 = arith.subf %55, %58 : vector<8x8xf32>
    %60 = math.exp %59 : vector<8x8xf32>
    %cst_24 = arith.constant dense<0.000000e+00> : vector<8xf32>
    %61 = vector.multi_reduction <add>, %60, %cst_24 [1] : vector<8x8xf32> to vector<8xf32>
    %62 = vector.shape_cast %61 : vector<8xf32> to vector<8x1xf32>
    %cst_25 = arith.constant 1.000000e+00 : f32
    %63 = vector.broadcast %cst_25 : f32 to vector<8x1xf32>
    %64 = arith.divf %63, %62 : vector<8x1xf32>
    %cst_26 = arith.constant dense<0.000000e+00> : vector<8x4xf32>
    %65 = tpu.matmul %60, %54, %cst_26 {dimension_numbers = #tpu.dot_dimension_numbers<[1], [0], [0], [1], [0, 0, 1, 1], [], []>} : vector<8x8xf32>, vector<8x4xf32>, vector<8x4xf32> -> vector<8x4xf32>
    %66 = vector.broadcast %64 : vector<8x1xf32> to vector<8x4xf32>
    %67 = arith.mulf %65, %66 : vector<8x4xf32>
    %68 = vector.extract_strided_slice %12 {offsets = [8, 0], sizes = [4, 32], strides = [1, 1]} : vector<32x32xf32> to vector<4x32xf32>
    %cst_27 = arith.constant dense<0.000000e+00> : vector<8x32xf32>
    %69 = tpu.matmul %67, %68, %cst_27 {dimension_numbers = #tpu.dot_dimension_numbers<[1], [0], [0], [1], [0, 0, 1, 1], [], []>} : vector<8x4xf32>, vector<4x32xf32>, vector<8x32xf32> -> vector<8x32xf32>
    %70 = arith.addf %51, %69 : vector<8x32xf32>
    %71 = vector.extract_strided_slice %9 {offsets = [0, 12], sizes = [8, 4], strides = [1, 1]} : vector<8x32xf32> to vector<8x4xf32>
    %72 = vector.extract_strided_slice %10 {offsets = [0, 12], sizes = [8, 4], strides = [1, 1]} : vector<8x32xf32> to vector<8x4xf32>
    %73 = vector.extract_strided_slice %11 {offsets = [0, 12], sizes = [8, 4], strides = [1, 1]} : vector<8x32xf32> to vector<8x4xf32>
    %cst_28 = arith.constant dense<0.000000e+00> : vector<8x8xf32>
    %74 = tpu.matmul %71, %72, %cst_28 {dimension_numbers = #tpu.dot_dimension_numbers<[1], [1], [0], [0], [0, 0, 1, 0], [], []>} : vector<8x4xf32>, vector<8x4xf32>, vector<8x8xf32> -> vector<8x8xf32>
    %cst_29 = arith.constant dense<0xFF800000> : vector<8xf32>
    %75 = vector.multi_reduction <maximumf>, %74, %cst_29 [1] : vector<8x8xf32> to vector<8xf32>
    %76 = vector.shape_cast %75 : vector<8xf32> to vector<8x1xf32>
    %77 = vector.broadcast %76 : vector<8x1xf32> to vector<8x8xf32>
    %78 = arith.subf %74, %77 : vector<8x8xf32>
    %79 = math.exp %78 : vector<8x8xf32>
    %cst_30 = arith.constant dense<0.000000e+00> : vector<8xf32>
    %80 = vector.multi_reduction <add>, %79, %cst_30 [1] : vector<8x8xf32> to vector<8xf32>
    %81 = vector.shape_cast %80 : vector<8xf32> to vector<8x1xf32>
    %cst_31 = arith.constant 1.000000e+00 : f32
    %82 = vector.broadcast %cst_31 : f32 to vector<8x1xf32>
    %83 = arith.divf %82, %81 : vector<8x1xf32>
    %cst_32 = arith.constant dense<0.000000e+00> : vector<8x4xf32>
    %84 = tpu.matmul %79, %73, %cst_32 {dimension_numbers = #tpu.dot_dimension_numbers<[1], [0], [0], [1], [0, 0, 1, 1], [], []>} : vector<8x8xf32>, vector<8x4xf32>, vector<8x4xf32> -> vector<8x4xf32>
    %85 = vector.broadcast %83 : vector<8x1xf32> to vector<8x4xf32>
    %86 = arith.mulf %84, %85 : vector<8x4xf32>
    %87 = vector.extract_strided_slice %12 {offsets = [12, 0], sizes = [4, 32], strides = [1, 1]} : vector<32x32xf32> to vector<4x32xf32>
    %cst_33 = arith.constant dense<0.000000e+00> : vector<8x32xf32>
    %88 = tpu.matmul %86, %87, %cst_33 {dimension_numbers = #tpu.dot_dimension_numbers<[1], [0], [0], [1], [0, 0, 1, 1], [], []>} : vector<8x4xf32>, vector<4x32xf32>, vector<8x32xf32> -> vector<8x32xf32>
    %89 = arith.addf %70, %88 : vector<8x32xf32>
    %90 = vector.extract_strided_slice %9 {offsets = [0, 16], sizes = [8, 4], strides = [1, 1]} : vector<8x32xf32> to vector<8x4xf32>
    %91 = vector.extract_strided_slice %10 {offsets = [0, 16], sizes = [8, 4], strides = [1, 1]} : vector<8x32xf32> to vector<8x4xf32>
    %92 = vector.extract_strided_slice %11 {offsets = [0, 16], sizes = [8, 4], strides = [1, 1]} : vector<8x32xf32> to vector<8x4xf32>
    %cst_34 = arith.constant dense<0.000000e+00> : vector<8x8xf32>
    %93 = tpu.matmul %90, %91, %cst_34 {dimension_numbers = #tpu.dot_dimension_numbers<[1], [1], [0], [0], [0, 0, 1, 0], [], []>} : vector<8x4xf32>, vector<8x4xf32>, vector<8x8xf32> -> vector<8x8xf32>
    %cst_35 = arith.constant dense<0xFF800000> : vector<8xf32>
    %94 = vector.multi_reduction <maximumf>, %93, %cst_35 [1] : vector<8x8xf32> to vector<8xf32>
    %95 = vector.shape_cast %94 : vector<8xf32> to vector<8x1xf32>
    %96 = vector.broadcast %95 : vector<8x1xf32> to vector<8x8xf32>
    %97 = arith.subf %93, %96 : vector<8x8xf32>
    %98 = math.exp %97 : vector<8x8xf32>
    %cst_36 = arith.constant dense<0.000000e+00> : vector<8xf32>
    %99 = vector.multi_reduction <add>, %98, %cst_36 [1] : vector<8x8xf32> to vector<8xf32>
    %100 = vector.shape_cast %99 : vector<8xf32> to vector<8x1xf32>
    %cst_37 = arith.constant 1.000000e+00 : f32
    %101 = vector.broadcast %cst_37 : f32 to vector<8x1xf32>
    %102 = arith.divf %101, %100 : vector<8x1xf32>
    %cst_38 = arith.constant dense<0.000000e+00> : vector<8x4xf32>
    %103 = tpu.matmul %98, %92, %cst_38 {dimension_numbers = #tpu.dot_dimension_numbers<[1], [0], [0], [1], [0, 0, 1, 1], [], []>} : vector<8x8xf32>, vector<8x4xf32>, vector<8x4xf32> -> vector<8x4xf32>
    %104 = vector.broadcast %102 : vector<8x1xf32> to vector<8x4xf32>
    %105 = arith.mulf %103, %104 : vector<8x4xf32>
    %106 = vector.extract_strided_slice %12 {offsets = [16, 0], sizes = [4, 32], strides = [1, 1]} : vector<32x32xf32> to vector<4x32xf32>
    %cst_39 = arith.constant dense<0.000000e+00> : vector<8x32xf32>
    %107 = tpu.matmul %105, %106, %cst_39 {dimension_numbers = #tpu.dot_dimension_numbers<[1], [0], [0], [1], [0, 0, 1, 1], [], []>} : vector<8x4xf32>, vector<4x32xf32>, vector<8x32xf32> -> vector<8x32xf32>
    %108 = arith.addf %89, %107 : vector<8x32xf32>
    %109 = vector.extract_strided_slice %9 {offsets = [0, 20], sizes = [8, 4], strides = [1, 1]} : vector<8x32xf32> to vector<8x4xf32>
    %110 = vector.extract_strided_slice %10 {offsets = [0, 20], sizes = [8, 4], strides = [1, 1]} : vector<8x32xf32> to vector<8x4xf32>
    %111 = vector.extract_strided_slice %11 {offsets = [0, 20], sizes = [8, 4], strides = [1, 1]} : vector<8x32xf32> to vector<8x4xf32>
    %cst_40 = arith.constant dense<0.000000e+00> : vector<8x8xf32>
    %112 = tpu.matmul %109, %110, %cst_40 {dimension_numbers = #tpu.dot_dimension_numbers<[1], [1], [0], [0], [0, 0, 1, 0], [], []>} : vector<8x4xf32>, vector<8x4xf32>, vector<8x8xf32> -> vector<8x8xf32>
    %cst_41 = arith.constant dense<0xFF800000> : vector<8xf32>
    %113 = vector.multi_reduction <maximumf>, %112, %cst_41 [1] : vector<8x8xf32> to vector<8xf32>
    %114 = vector.shape_cast %113 : vector<8xf32> to vector<8x1xf32>
    %115 = vector.broadcast %114 : vector<8x1xf32> to vector<8x8xf32>
    %116 = arith.subf %112, %115 : vector<8x8xf32>
    %117 = math.exp %116 : vector<8x8xf32>
    %cst_42 = arith.constant dense<0.000000e+00> : vector<8xf32>
    %118 = vector.multi_reduction <add>, %117, %cst_42 [1] : vector<8x8xf32> to vector<8xf32>
    %119 = vector.shape_cast %118 : vector<8xf32> to vector<8x1xf32>
    %cst_43 = arith.constant 1.000000e+00 : f32
    %120 = vector.broadcast %cst_43 : f32 to vector<8x1xf32>
    %121 = arith.divf %120, %119 : vector<8x1xf32>
    %cst_44 = arith.constant dense<0.000000e+00> : vector<8x4xf32>
    %122 = tpu.matmul %117, %111, %cst_44 {dimension_numbers = #tpu.dot_dimension_numbers<[1], [0], [0], [1], [0, 0, 1, 1], [], []>} : vector<8x8xf32>, vector<8x4xf32>, vector<8x4xf32> -> vector<8x4xf32>
    %123 = vector.broadcast %121 : vector<8x1xf32> to vector<8x4xf32>
    %124 = arith.mulf %122, %123 : vector<8x4xf32>
    %125 = vector.extract_strided_slice %12 {offsets = [20, 0], sizes = [4, 32], strides = [1, 1]} : vector<32x32xf32> to vector<4x32xf32>
    %cst_45 = arith.constant dense<0.000000e+00> : vector<8x32xf32>
    %126 = tpu.matmul %124, %125, %cst_45 {dimension_numbers = #tpu.dot_dimension_numbers<[1], [0], [0], [1], [0, 0, 1, 1], [], []>} : vector<8x4xf32>, vector<4x32xf32>, vector<8x32xf32> -> vector<8x32xf32>
    %127 = arith.addf %108, %126 : vector<8x32xf32>
    %128 = vector.extract_strided_slice %9 {offsets = [0, 24], sizes = [8, 4], strides = [1, 1]} : vector<8x32xf32> to vector<8x4xf32>
    %129 = vector.extract_strided_slice %10 {offsets = [0, 24], sizes = [8, 4], strides = [1, 1]} : vector<8x32xf32> to vector<8x4xf32>
    %130 = vector.extract_strided_slice %11 {offsets = [0, 24], sizes = [8, 4], strides = [1, 1]} : vector<8x32xf32> to vector<8x4xf32>
    %cst_46 = arith.constant dense<0.000000e+00> : vector<8x8xf32>
    %131 = tpu.matmul %128, %129, %cst_46 {dimension_numbers = #tpu.dot_dimension_numbers<[1], [1], [0], [0], [0, 0, 1, 0], [], []>} : vector<8x4xf32>, vector<8x4xf32>, vector<8x8xf32> -> vector<8x8xf32>
    %cst_47 = arith.constant dense<0xFF800000> : vector<8xf32>
    %132 = vector.multi_reduction <maximumf>, %131, %cst_47 [1] : vector<8x8xf32> to vector<8xf32>
    %133 = vector.shape_cast %132 : vector<8xf32> to vector<8x1xf32>
    %134 = vector.broadcast %133 : vector<8x1xf32> to vector<8x8xf32>
    %135 = arith.subf %131, %134 : vector<8x8xf32>
    %136 = math.exp %135 : vector<8x8xf32>
    %cst_48 = arith.constant dense<0.000000e+00> : vector<8xf32>
    %137 = vector.multi_reduction <add>, %136, %cst_48 [1] : vector<8x8xf32> to vector<8xf32>
    %138 = vector.shape_cast %137 : vector<8xf32> to vector<8x1xf32>
    %cst_49 = arith.constant 1.000000e+00 : f32
    %139 = vector.broadcast %cst_49 : f32 to vector<8x1xf32>
    %140 = arith.divf %139, %138 : vector<8x1xf32>
    %cst_50 = arith.constant dense<0.000000e+00> : vector<8x4xf32>
    %141 = tpu.matmul %136, %130, %cst_50 {dimension_numbers = #tpu.dot_dimension_numbers<[1], [0], [0], [1], [0, 0, 1, 1], [], []>} : vector<8x8xf32>, vector<8x4xf32>, vector<8x4xf32> -> vector<8x4xf32>
    %142 = vector.broadcast %140 : vector<8x1xf32> to vector<8x4xf32>
    %143 = arith.mulf %141, %142 : vector<8x4xf32>
    %144 = vector.extract_strided_slice %12 {offsets = [24, 0], sizes = [4, 32], strides = [1, 1]} : vector<32x32xf32> to vector<4x32xf32>
    %cst_51 = arith.constant dense<0.000000e+00> : vector<8x32xf32>
    %145 = tpu.matmul %143, %144, %cst_51 {dimension_numbers = #tpu.dot_dimension_numbers<[1], [0], [0], [1], [0, 0, 1, 1], [], []>} : vector<8x4xf32>, vector<4x32xf32>, vector<8x32xf32> -> vector<8x32xf32>
    %146 = arith.addf %127, %145 : vector<8x32xf32>
    %147 = vector.extract_strided_slice %9 {offsets = [0, 28], sizes = [8, 4], strides = [1, 1]} : vector<8x32xf32> to vector<8x4xf32>
    %148 = vector.extract_strided_slice %10 {offsets = [0, 28], sizes = [8, 4], strides = [1, 1]} : vector<8x32xf32> to vector<8x4xf32>
    %149 = vector.extract_strided_slice %11 {offsets = [0, 28], sizes = [8, 4], strides = [1, 1]} : vector<8x32xf32> to vector<8x4xf32>
    %cst_52 = arith.constant dense<0.000000e+00> : vector<8x8xf32>
    %150 = tpu.matmul %147, %148, %cst_52 {dimension_numbers = #tpu.dot_dimension_numbers<[1], [1], [0], [0], [0, 0, 1, 0], [], []>} : vector<8x4xf32>, vector<8x4xf32>, vector<8x8xf32> -> vector<8x8xf32>
    %cst_53 = arith.constant dense<0xFF800000> : vector<8xf32>
    %151 = vector.multi_reduction <maximumf>, %150, %cst_53 [1] : vector<8x8xf32> to vector<8xf32>
    %152 = vector.shape_cast %151 : vector<8xf32> to vector<8x1xf32>
    %153 = vector.broadcast %152 : vector<8x1xf32> to vector<8x8xf32>
    %154 = arith.subf %150, %153 : vector<8x8xf32>
    %155 = math.exp %154 : vector<8x8xf32>
    %cst_54 = arith.constant dense<0.000000e+00> : vector<8xf32>
    %156 = vector.multi_reduction <add>, %155, %cst_54 [1] : vector<8x8xf32> to vector<8xf32>
    %157 = vector.shape_cast %156 : vector<8xf32> to vector<8x1xf32>
    %cst_55 = arith.constant 1.000000e+00 : f32
    %158 = vector.broadcast %cst_55 : f32 to vector<8x1xf32>
    %159 = arith.divf %158, %157 : vector<8x1xf32>
    %cst_56 = arith.constant dense<0.000000e+00> : vector<8x4xf32>
    %160 = tpu.matmul %155, %149, %cst_56 {dimension_numbers = #tpu.dot_dimension_numbers<[1], [0], [0], [1], [0, 0, 1, 1], [], []>} : vector<8x8xf32>, vector<8x4xf32>, vector<8x4xf32> -> vector<8x4xf32>
    %161 = vector.broadcast %159 : vector<8x1xf32> to vector<8x4xf32>
    %162 = arith.mulf %160, %161 : vector<8x4xf32>
    %163 = vector.extract_strided_slice %12 {offsets = [28, 0], sizes = [4, 32], strides = [1, 1]} : vector<32x32xf32> to vector<4x32xf32>
    %cst_57 = arith.constant dense<0.000000e+00> : vector<8x32xf32>
    %164 = tpu.matmul %162, %163, %cst_57 {dimension_numbers = #tpu.dot_dimension_numbers<[1], [0], [0], [1], [0, 0, 1, 1], [], []>} : vector<8x4xf32>, vector<4x32xf32>, vector<8x32xf32> -> vector<8x32xf32>
    %165 = arith.addf %146, %164 : vector<8x32xf32>
    %c0_58 = arith.constant 0 : index
    %c0_59 = arith.constant 0 : index
    %166 = vector.load %arg5[%c0_58, %c0_59] : memref<1x32xf32, #tpu.memory_space<vmem>>, vector<1x32xf32>
    %167 = vector.broadcast %166 : vector<1x32xf32> to vector<8x32xf32>
    %168 = arith.addf %165, %167 : vector<8x32xf32>
    %c0_60 = arith.constant 0 : index
    %c0_61 = arith.constant 0 : index
    %c0_62 = arith.constant 0 : index
    %169 = vector.load %arg6[%c0_60, %c0_61, %c0_62] : memref<1x8x32xf32, #tpu.memory_space<vmem>>, vector<1x8x32xf32>
    %170 = vector.shape_cast %169 : vector<1x8x32xf32> to vector<8x32xf32>
    %171 = vector.shape_cast %168 : vector<8x32xf32> to vector<1x8x32xf32>
    tpu.vector_store %arg6[%c0_60, %c0_61, %c0_62], %171 {strides = array<i32>} : memref<1x8x32xf32, #tpu.memory_space<vmem>>, vector<1x8x32xf32>,
    return
  }
  func.func @transform_0(%arg0: i32) -> (i32, i32, i32) {
    %c0_i32 = arith.constant 0 : i32
    %c0_i32_0 = arith.constant 0 : i32
    %c0_i32_1 = arith.constant 0 : i32
    return %arg0, %c0_i32, %c0_i32_0 : i32, i32, i32
  }
  func.func @transform_1(%arg0: i32) -> (i32, i32) {
    %c0_i32 = arith.constant 0 : i32
    %c0_i32_0 = arith.constant 0 : i32
    %c0_i32_1 = arith.constant 0 : i32
    return %c0_i32, %c0_i32_0 : i32, i32
  }
  func.func @transform_2(%arg0: i32) -> (i32, i32) {
    %c0_i32 = arith.constant 0 : i32
    %c0_i32_0 = arith.constant 0 : i32
    %c0_i32_1 = arith.constant 0 : i32
    return %c0_i32, %c0_i32_0 : i32, i32
  }
  func.func @transform_3(%arg0: i32) -> (i32, i32) {
    %c0_i32 = arith.constant 0 : i32
    %c0_i32_0 = arith.constant 0 : i32
    %c0_i32_1 = arith.constant 0 : i32
    return %c0_i32, %c0_i32_0 : i32, i32
  }
  func.func @transform_4(%arg0: i32) -> (i32, i32) {
    %c0_i32 = arith.constant 0 : i32
    %c0_i32_0 = arith.constant 0 : i32
    %c0_i32_1 = arith.constant 0 : i32
    return %c0_i32, %c0_i32_0 : i32, i32
  }
  func.func @transform_5(%arg0: i32) -> (i32, i32, i32) {
    %c0_i32 = arith.constant 0 : i32
    %c0_i32_0 = arith.constant 0 : i32
    %c0_i32_1 = arith.constant 0 : i32
    return %arg0, %c0_i32, %c0_i32_0 : i32, i32, i32
  }
}

</mosaic_0001>

<bundles_post_ra>
// kernel: tpu_custom_call.1
= control target key start
LH: loop header
LB: loop body
LE: loop exit
PB: predicated region body
PF: predicated region fallthrough
CT: control target
= control target key end

     0   :  { %10 = vsyncpa [#allocation3], 0  ;;  %s3340_s0 = inlined_call_operand.hbm [shape: f32[2,8,32], index: 0, kind: input, shape index: {}]   ;;  %s3341_s1 = inlined_call_operand.hbm [shape: f32[32,96], index: 1, kind: input, shape index: {}]   ;;  %s3342_s2 = inlined_call_operand.vmem [shape: f32[1,96], index: 2, kind: input, shape index: {}]   ;;  %s3343_s3 = inlined_call_operand.hbm [shape: f32[32,32], index: 3, kind: input, shape index: {}]   ;;  %s3344_s4 = inlined_call_operand.vmem [shape: f32[1,32], index: 4, kind: input, shape index: {}]   ;;  %s3345_s5 = inlined_call_operand.hbm [shape: f32[2,8,32], index: 5, kind: output, shape index: {}]  }
   0x1   :  { %12 = vsyncpa [#allocation3 + $0x1], 0 }
   0x2   :  { %13 = vsyncpa [#allocation6], 0 }
   0x3   :  { %14 = vsyncpa [#allocation4], 0 }
   0x4   :  { %16 = vsyncpa [#allocation4 + $0x1], 0  ;;  %s2997_s18 = smov 0   ;;  %s2999_s19 = smov 0  }
   0x5   :  { %s3001_s20 = smov 0   ;;  %s3003_s21 = smov 0  }
   0x6 LB: > { %s3018_s22 = sadd.s32 4294967295, %s2934_s21   ;;  %s2417_s23 = sadd.s32 4294967294, %s2934_s21   ;;  %s2934_s21 = sphi %s3003_s21, %s3367_s21   ;;  %s2930_s20 = sphi %s3001_s20, %s3366_s20   ;;  %s2926_s19 = sphi %s2999_s19, %s3365_s19   ;;  %s2922_s18 = sphi %s2997_s18, %s3364_s18  }
   0x7   : > { %p42_p0 = scmp.ne.s32.totalorder %s2926_s19, %s2922_s18  ;;  %p3346_p1 = scmp.eq.s32.totalorder %s3018_s22, 0 }
   0x8   : > { %p156_p3 = scmp.eq.s32.totalorder %s2417_s23, 1  ;;  %p2418_p5 = scmp.ge.s32.totalorder %s2934_s21, 1 }
   0x9   : > { %p3027_p4 = por %p3346_p1, %p42_p0  ;;  %p163_p7 = scmp.lt.s32.totalorder %s2934_s21, 3 }
   0xa   : > { %p3032_p6 = por %p156_p3, %p42_p0  ;;  %s2936_s27 = smov [#allocation5]  }
   0xb   : > { %s3350_s24 = scalar_select %p3027_p4, 1, 0 }
   0xc   : > { %s3351_s25 = scalar_select %p3032_p6, 1, 0 }
   0xd   : > { %p3037_p8 = pnand %p2418_p5, %p163_p7  ;;  %s175_s28 = sshll.u32 %s2936_s27, 4  ;;  %s176_s28 = int_to_ptr.vmem [resolvable:$true] %s175_s28 }
   0xe   : > { %s2937_s30 = smov [#allocation7]   ;;  %s2797_s7 = scalar_lea.vmem %s176_s28, 512 }
   0xf   : > { %s3352_s26 = scalar_select %p3037_p8, 1, 0 }
  0x10   : > { %p2672_p9 = pneg %p3037_p8  ;;  %s191_s6 = sshll.u32 %s2937_s30, 4  ;;  %s192_s6 = int_to_ptr.vmem [resolvable:$true] %s191_s6 }
  0x11   : > { %p2798_p13 = scmp.ne.s32.totalorder %s176_s28, %s2797_s7  ;;  %p2805_p5 = scmp.lt.s32.totalorder %s176_s28, %s176_s28 }
  0x12   : > { %p3046_p11 = pnand %p2672_p9, %p3346_p1  ;;  %p2806_p7 = scmp.lt.s32.totalorder %s2797_s7, %s2797_s7 }
  0x14   : > { %p2788_p12 = pneg %p3046_p11  ;;  %p2807_p10 = por %p2806_p7, %p2805_p5 }
  0x16   : > { %p2800_p0 = pnand %p2798_p13, %p2788_p12 }
  0x18   : > { %p2801_p3 = pneg %p2800_p0 }
  0x1a   : > { %p2808_p9 = pnand %p2807_p10, %p2801_p3 }
  0x1c   : > { %2811 = shalt.err (!%p2808_p9)
}
  0x1d   : > { %s2938_s8 = smov 128   ;;  %s2939_s9 = smov 8  }
  0x1e   : > { %2675 = dma.hbm_to_vmem [thread:$0]  (!%p3046_p11), %s3341_s1, 512, %s176_s28, [#allocation6], %s2938_s8, %s2938_s8, %s2939_s9  }
  0x1f   : > { %s2823_s12 = scalar_lea.vmem %s192_s6, 512  ;;  %p2831_p2 = scmp.lt.s32.totalorder %s192_s6, %s192_s6 }
  0x20   : > { %p2824_p1 = scmp.ne.s32.totalorder %s192_s6, %s2823_s12  ;;  %p2832_p6 = scmp.lt.s32.totalorder %s2823_s12, %s2823_s12 }
  0x22   : > { %p2826_p13 = pnand %p2824_p1, %p2788_p12  ;;  %p2833_p5 = por %p2832_p6, %p2831_p2 }
  0x24   : > { %p2827_p0 = pneg %p2826_p13 }
  0x26   : > { %p2834_p10 = pnand %p2833_p5, %p2827_p0 }
  0x28   : > { %2837 = shalt.err (!%p2834_p10)
}
  0x29   : > { %2678 = dma.hbm_to_vmem [thread:$0]  (!%p3046_p11), %s3343_s3, 512, %s192_s6, [#allocation6], %s2938_s8, %s2938_s8, %s2939_s9  }
  0x2a   : > { %s3069_s15 = sadd.s32 1, %s2934_s21   ;;  %s29_s16 = sadd.s32 1, %s2930_s20 }
  0x2b   : > { %s26_s17 = ssub.s32 %s2934_s21, %s3069_s15  ;;  %p36_p1 = scmp.ne.s32.totalorder %s2930_s20, %s2926_s19 }
  0x2c   : > { %p27_p2 = scmp.eq.s32.totalorder %s26_s17, 0  ;;  %p37_p6 = scmp.eq.s32.totalorder %s2934_s21, 0 }
  0x2d   : > { %p3354_p12 = scmp.eq.s32.totalorder %s3018_s22, 1  ;;  %p2689_p7 = scmp.lt.s32.totalorder %s2934_s21, 2 }
  0x2e   : > { %s3085_s27 = scalar_select %p27_p2, %s2930_s20, %s29_s16  }
  0x2f   : > { %p3079_p3 = por %p3354_p12, %p36_p1  ;;  %p38_p9 = por %p37_p6, %p36_p1 }
  0x30   : > { %s208_s28 = sand.u32 1, %s2930_s20   ;;  %s2423_s30 = sshll.u32 %s2934_s21, 7 }
  0x31   : > { %s3355_s23 = scalar_select %p3079_p3, 1, 0 }
  0x32   : > { %s2422_s29 = sshll.u32 %s208_s28, 3  ;;  %s3092_s8 = scalar_lea.hbm %s3340_s0, %s2423_s30 }
  0x33   : > { %s212_s9 = scalar_lea.vmem [#allocation2], %s2422_s29  ;;  %p3094_p11 = pnand %p2689_p7, %p38_p9 }
  0x34   : > { %s219_s10 = sshll.u32 %s212_s9, 4  ;;  %s209_s12 = scalar_lea.sflag [#allocation3], %s208_s28  ;;  %s220_s10 = int_to_ptr.vmem [resolvable:$true] %s219_s10 }
  0x35   : > { %s2838_s13 = scalar_lea.hbm %s3092_s8, 128  ;;  %p2840_p0 = pneg %p3094_p11 }
  0x36   : > { %p2839_p13 = scmp.ne.s32.totalorder %s3092_s8, %s2838_s13  ;;  %s2843_s17 = scalar_lea.hbm %s3340_s0, 256 }
  0x37   : > { %p2844_p1 = scmp.lt.s32.totalorder %s3092_s8, %s3340_s0  ;;  %p2845_p2 = scmp.lt.s32.totalorder %s2843_s17, %s2838_s13 }
  0x38   : > { %p2841_p5 = pnand %p2840_p0, %p2839_p13 }
  0x39   : > { %p2846_p6 = por %p2845_p2, %p2844_p1 }
  0x3a   : > { %p2842_p10 = pneg %p2841_p5 }
  0x3c   : > { %p2847_p12 = pnand %p2846_p6, %p2842_p10 }
  0x3e   : > { %2850 = shalt.err (!%p2847_p12)
}
  0x3f   : > { %s2851_s6 = scalar_lea.vmem %s220_s10, 128  ;;  %s2940_s28 = smov [#allocation2]  }
  0x40   : > { %p2852_p7 = scmp.ne.s32.totalorder %s220_s10, %s2851_s6  ;;  %s2856_s7 = sshll.u32 %s2940_s28, 4  ;;  %s2857_s7 = int_to_ptr.vmem [resolvable:$false] %s2856_s7 }
  0x41   : > { %s2858_s9 = scalar_lea.vmem %s2857_s7, 256  ;;  %p2859_p13 = scmp.lt.s32.totalorder %s220_s10, %s2857_s7 }
  0x42   : > { %p2854_p9 = pnand %p2852_p7, %p2840_p0  ;;  %p2860_p5 = scmp.lt.s32.totalorder %s2858_s9, %s2851_s6 }
  0x44   : > { %p2855_p3 = pneg %p2854_p9  ;;  %p2861_p4 = por %p2860_p5, %p2859_p13 }
  0x46   : > { %p2862_p8 = pnand %p2861_p4, %p2855_p3 }
  0x48   : > { %2865 = shalt.err (!%p2862_p8)
}
  0x49   : > { %2682 = dma.hbm_to_vmem [thread:$0]  (!%p3094_p11), %s3092_s8, 128, %s220_s10, %s209_s12  }
  0x4a   : > { %p3357_p10 = scmp.ne.s32.totalorder %s3352_s26, 0 }
  0x4b   : > { %s3115_s13 = sand.u32 (!%p3357_p10), 1, %s2926_s19   ;;  %p3358_p4 = scmp.ne.s32.totalorder (!%p3357_p10), %s3350_s24, 0 }
  0x4c   : > { %228 = sbr.rel (%p3357_p10) target bundleno = 3486 (0xd9e), region = 40  ;;  %s2425_s14 = sshll.u32 (!%p3357_p10), %s3115_s13, 3 }
  0x4d   : > { %s231_s16 = scalar_lea.sflag (!%p3357_p10), [#allocation3], %s3115_s13  ;;  %s234_s17 = scalar_lea.vmem (!%p3357_p10), [#allocation2], %s2425_s14 }
  0x51   : > { %2909 = dma.done.wait (%p3358_p4), %s231_s16, 128  }
  0x52   : > { %2911 = vsyncadd (%p3358_p4), %s231_s16, 4294967168  ;;  %p3359_p8 = scmp.eq.s32.totalorder %s3018_s22, 0 }
  0x54   : > { %2913 = dma.done.wait (%p3359_p8), [#allocation6], 1024   ;;  %p3360_p3 = pmov %p3359_p8 }
  0x55   : > { %v2941_v0 = vmov 0.0   ;;  %vm2942_vm0 = vmmov 0   ;;  %v273_v1 = vld [vmem:[#allocation5 + $0x18] sm:$0xff]  ;;  %v272_v2 = vld [vmem:[#allocation5 + $0x10] sm:$0xff]  ;;  %v271_v3 = vld [vmem:[#allocation5 + $0x8] sm:$0xff]  ;;  %vm281_vm1 = vcmask 261120  }
  0x56   : > { %2915 = vsyncadd (%p3360_p3), [#allocation6], 4294966272  ;;  %2529 = vmatprep.subr.mxu0 %v2941_v0  ;;  %2537 = vmatprep.mubr.msk.f32.mxu0 %vm2942_vm0, %v2941_v0  ;;  %v270_v4 = vld [vmem:[#allocation5] sm:$0xff]  ;;  %v269_v5 = vld [vmem:[%s234_s17] sm:$0xff]  ;;  %s2943_s8 = smov 96   ;;  %s2944_s10 = smov 124  }
  0x57   : > { %2540 = vmatprep.subr.mxu1 %v2941_v0  ;;  %2542 = vmatprep.mubr.msk.f32.mxu1 %vm2942_vm0, %v2941_v0  ;;  %v2429_v6 = vld [vmem:[%s3342_s2] ss:$0 sm:$0xff]  ;;  %s2945_s11 = smov 92   ;;  %vm363_vm2 = vcmask 31744   ;;  %vm439_vm3 = vcmask 64512   ;;  %s2946_s12 = smov 60  }
  0x58   : > { %2530 = vmatpush3.msra.mxu0 %v273_v1  ;;  %s2947_s30 = smov 64   ;;  %s2948_s29 = smov 88   ;;  %v356_v32 = vld [vmem:[#allocation7] sm:$0xff]  ;;  %vm699_vm4 = vcmask 1043456   ;;  %v357_v62 = vld [vmem:[#allocation7 + $0x8] sm:$0xff] }
  0x59   : > { %2531 = vmatprep.subr.mxu0 %v2941_v0  ;;  %s2949_s6 = smov 120   ;;  %s2950_s28 = smov 56   ;;  %v695_v33 = vrot.slane %v356_v32, 4  ;;  %v1256_v63 = vrot.slane %v357_v62, 4 }
  0x5a   : > { %2532 = vmatpush3.msra.mxu0 %v272_v2  ;;  %s2951_s7 = smov 84   ;;  %s2952_s9 = smov 116  }
  0x5b   : > { %2533 = vmatprep.subr.mxu0 %v2941_v0  ;;  %s2953_s16 = smov 80   ;;  %s2954_s17 = smov 112  }
  0x5c   : > { %2534 = vmatpush3.msra.mxu0 %v271_v3  ;;  %s2955_s24 = smov 52   ;;  %s2956_s26 = smov 48  }
  0x5d   : > { %2535 = vmatprep.subr.mxu0 %v2941_v0  ;;  %p3361_p0 = scmp.ne.s32.totalorder %s3355_s23, 0 }
  0x5e   : > { %2536 = vmatpush3.msra.mxu0 %v270_v4 }
  0x5f   : > { %2538 = vmatmul.mubr.msk.f32.vlgmr.msra.gmra.mxu0 %vm281_vm1, %v269_v5  ;;  %2550 = vmatprep.subr.mxu0 %v2941_v0 }
  0x60   : > { %2552 = vmatprep.mubr.msk.f32.mxu0 %vm2942_vm0, %v2941_v0 }
 0x11f   : > { %v351_v7 = vpop.f32.mrf.mxu0 }
 0x120   : > { %v3145_v8 = vadd.f32 %v2429_v6, %v351_v7 }
 0x121   : > { %v2539_v9 = vpop.f32.mrf.mxu0 }
 0x122   : > { %361 = vrot.lane.b32.xlu0 %v3145_v8, %s2943_s8  ;;  %v3149_v10 = vmul.f32 0.5, %v3145_v8  ;;  %s2957_s8 = smov 108  }
 0x124   : > { %528 = vrot.lane.b32.xlu1 %v3149_v10, %s2944_s10  ;;  %s2958_s10 = smov 76  }
 0x126   : > { %530 = vrot.lane.b32.xlu0 %v3145_v8, %s2945_s11  ;;  %s2959_s11 = smov 72  }
 0x194   : > { %v362_v11 = vpop.permute.xlu0 %361 }
 0x195   : > { %2541 = vmatpush3.xpose.msk.msra.mxu1 %vm363_vm2, %v362_v11 }
 0x196   : > { %2545 = vmatprep.subr.mxu1 %v2941_v0  ;;  %v529_v13 = vpop.permute.xlu1 %528 }
 0x198   : > { %v531_v12 = vpop.permute.xlu0 %530  ;;  %2543 = vmatmul.mubr.msk.f32.vlgmr.msra.gmra.mxu1 %vm363_vm2, %v3149_v10 }
 0x199   : > { %2551 = vmatpush3.xpose.msk.msra.mxu0 %vm363_vm2, %v531_v12  ;;  %2547 = vmatprep.mubr.msk.f32.mxu1 %vm2942_vm0, %v2941_v0 }
 0x19a   : > { %2560 = vmatprep.subr.mxu0 %v2941_v0 }
 0x19c   : > { %2553 = vmatmul.mubr.msk.f32.vlgmr.msra.gmra.mxu0 %vm363_vm2, %v529_v13 }
 0x19d   : > { %2562 = vmatprep.mubr.msk.f32.mxu0 %vm2942_vm0, %v2941_v0  ;;  %2561 = vmatpush3.msk.msra.mxu0 %vm699_vm4, %v695_v33 }
 0x19e   : > { %2570 = vmatprep.subr.mxu0 %v2941_v0 }
 0x258   : > { %v435_v14 = vpop.f32.mrf.mxu1 }
 0x259   : > { %v440_v15 = vsel %vm439_vm3, %v435_v14, -inf }
 0x25a   : > { %441 = vmax.xlane.f32.xlu1 %v440_v15  ;;  %v2544_v16 = vpop.f32.mrf.mxu1 }
 0x25c   : > { %v602_v17 = vpop.f32.mrf.mxu0 }
 0x25d   : > { %v606_v18 = vsel %vm439_vm3, %v602_v17, -inf }
 0x25e   : > { %607 = vmax.xlane.f32.xlu0 %v606_v18  ;;  %v2554_v19 = vpop.f32.mrf.mxu0 }
 0x26b   : > { %617 = vrot.lane.b32.xlu1 %v3145_v8, %s2946_s12  ;;  %s2960_s12 = smov 104  }
 0x274   : > { %451 = vrot.lane.b32.xlu0 %v3145_v8, %s2947_s30  ;;  %s2961_s30 = smov 44  }
 0x278   : > { %849 = vrot.lane.b32.xlu0 %v3145_v8, %s2948_s29  ;;  %s2962_s29 = smov 40  }
 0x27c   : > { %847 = vrot.lane.b32.xlu0 %v3149_v10, %s2949_s6  ;;  %s2963_s6 = smov 100  }
 0x2e3   : > { %v442_v20 = vpop.xlane.xlu1 %441 }
 0x2e4   : > { %v443_v21 = vsub.f32 %v435_v14, %v442_v20 }
 0x2e6   : > { %v444_v22 = vmul.f32 1.442695, %v443_v21 }
 0x2e7   : > { %v608_v23 = vpop.xlane.xlu0 %607  ;;  %v618_v28 = vpop.permute.xlu1 %617 }
 0x2e8   : > { %2754 = vpow2.f32 %v444_v22  ;;  %v609_v24 = vsub.f32 %v602_v17, %v608_v23 }
 0x2ea   : > { %v610_v25 = vmul.f32 1.442695, %v609_v24 }
 0x2eb   : > { %v452_v26 = vpop.permute.xlu0 %451 }
 0x2ec   : > { %2756 = vpow2.f32 %v610_v25  ;;  %2546 = vmatpush3.msra.mxu1 %v452_v26 }
 0x2ed   : > { %2555 = vmatprep.subr.mxu1 %v2941_v0 }
 0x2ef   : > { %v850_v34 = vpop.permute.xlu0 %849 }
 0x2f3   : > { %v848_v35 = vpop.permute.xlu0 %847 }
 0x2f5   : > { %v2755_v27 = vpop.eup %2754 }
 0x2f6   : > { %2548 = vmatmul.mubr.msk.f32.vlgmr.msra.gmra.mxu1 %vm439_vm3, %v2755_v27  ;;  %v446_v29 = vsel %vm439_vm3, %v2755_v27, 0.0 }
 0x2f7   : > { %2556 = vmatpush3.msra.mxu1 %v618_v28  ;;  %447 = vadd.xlane.f32.xlu0 %v446_v29 }
 0x2f8   : > { %2557 = vmatprep.mubr.msk.f32.mxu1 %vm2942_vm0, %v2941_v0  ;;  %2565 = vmatprep.subr.mxu1 %v2941_v0 }
 0x2f9   : > { %v2757_v30 = vpop.eup %2756 }
 0x2fa   : > { %2558 = vmatmul.mubr.msk.f32.vlgmr.msra.gmra.mxu1 %vm439_vm3, %v2757_v30  ;;  %v612_v31 = vsel %vm439_vm3, %v2757_v30, 0.0 }
 0x2fb   : > { %613 = vadd.xlane.f32.xlu1 %v612_v31  ;;  %2567 = vmatprep.mubr.msk.f32.mxu1 %vm2942_vm0, %v2941_v0 }
 0x2fc   : > { %2566 = vmatpush3.msk.msra.mxu1 %vm699_vm4, %v356_v32 }
 0x2fd   : > { %2575 = vmatprep.subr.mxu1 %v2941_v0 }
 0x30c   : > { %936 = vrot.lane.b32.xlu1 %v3145_v8, %s2950_s28  ;;  %s2964_s28 = smov 68  }
 0x30d   : > { %1092 = vrot.lane.b32.xlu0 %v3145_v8, %s2951_s7  ;;  %s2965_s7 = smov 36  }
 0x380   : > { %v448_v36 = vpop.xlane.xlu0 %447 }
 0x381   : > { %2758 = vrcp.f32 %v448_v36 }
 0x384   : > { %v614_v37 = vpop.xlane.xlu1 %613  ;;  %v1093_v59 = vpop.permute.xlu0 %1092 }
 0x385   : > { %2760 = vrcp.f32 %v614_v37 }
 0x388   : > { %v937_v42 = vpop.permute.xlu1 %936 }
 0x38e   : > { %v2759_v38 = vpop.eup %2758 }
 0x392   : > { %v2761_v43 = vpop.eup %2760 }
 0x3b6   : > { %v523_v39 = vpop.f32.mrf.mxu1 }
 0x3b7   : > { %v527_v40 = vmul.f32 %v2759_v38, %v523_v39 }
 0x3b8   : > { %v2549_v41 = vpop.f32.mrf.mxu1 }
 0x3b9   : > { %2568 = vmatmul.mubr.msk.f32.vlgmr.msra.gmra.mxu1 %vm363_vm2, %v527_v40  ;;  %v358_v41 = vld [vmem:[#allocation7 + $0x10] sm:$0xff] }
 0x3ba   : > { %2576 = vmatpush3.msra.mxu1 %v937_v42  ;;  %v689_v44 = vpop.f32.mrf.mxu1  ;;  %2577 = vmatprep.mubr.msk.f32.mxu1 %vm2942_vm0, %v2941_v0  ;;  %v1742_v42 = vrot.slane %v358_v41, 4 }
 0x3bb   : > { %v693_v45 = vmul.f32 %v2761_v43, %v689_v44  ;;  %2585 = vmatprep.subr.mxu1 %v2941_v0 }
 0x3bc   : > { %v2559_v46 = vpop.f32.mrf.mxu1 }
 0x3bd   : > { %2563 = vmatmul.mubr.msk.f32.vlgmr.msra.gmra.mxu0 %vm363_vm2, %v693_v45 }
 0x3be   : > { %2571 = vmatpush3.xpose.msk.msra.mxu0 %vm363_vm2, %v850_v34  ;;  %2572 = vmatprep.mubr.msk.f32.mxu0 %vm2942_vm0, %v2941_v0 }
 0x3bf   : > { %2580 = vmatprep.subr.mxu0 %v2941_v0 }
 0x3c1   : > { %2573 = vmatmul.mubr.msk.f32.vlgmr.msra.gmra.mxu0 %vm363_vm2, %v848_v35 }
 0x3c2   : > { %2582 = vmatprep.mubr.msk.f32.mxu0 %vm2942_vm0, %v2941_v0  ;;  %2581 = vmatpush3.msk.msra.mxu0 %vm699_vm4, %v357_v62 }
 0x3c3   : > { %2590 = vmatprep.subr.mxu0 %v2941_v0 }
 0x479   : > { %v843_v47 = vpop.f32.mrf.mxu1 }
 0x47b   : > { %v2569_v48 = vpop.f32.mrf.mxu1 }
 0x47d   : > { %v768_v49 = vpop.f32.mrf.mxu0 }
 0x47e   : > { %v3198_v50 = vadd.f32 %v843_v47, %v768_v49 }
 0x47f   : > { %v2564_v51 = vpop.f32.mrf.mxu0 }
 0x481   : > { %v921_v52 = vpop.f32.mrf.mxu0 }
 0x482   : > { %v925_v53 = vsel %vm439_vm3, %v921_v52, -inf }
 0x483   : > { %926 = vmax.xlane.f32.xlu1 %v925_v53  ;;  %v2574_v54 = vpop.f32.mrf.mxu0 }
 0x494   : > { %1090 = vrot.lane.b32.xlu1 %v3149_v10, %s2952_s9 }
 0x50c   : > { %v927_v55 = vpop.xlane.xlu1 %926 }
 0x50d   : > { %v928_v56 = vsub.f32 %v921_v52, %v927_v55 }
 0x50f   : > { %v929_v57 = vmul.f32 1.442695, %v928_v56 }
 0x510   : > { %v1091_v61 = vpop.permute.xlu1 %1090 }
 0x511   : > { %2762 = vpow2.f32 %v929_v57 }
 0x51e   : > { %v2763_v58 = vpop.eup %2762 }
 0x51f   : > { %2578 = vmatmul.mubr.msk.f32.vlgmr.msra.gmra.mxu1 %vm439_vm3, %v2763_v58  ;;  %v931_v60 = vsel %vm439_vm3, %v2763_v58, 0.0 }
 0x520   : > { %2586 = vmatpush3.xpose.msk.msra.mxu1 %vm363_vm2, %v1093_v59  ;;  %932 = vadd.xlane.f32.xlu1 %v931_v60 }
 0x521   : > { %2587 = vmatprep.mubr.msk.f32.mxu1 %vm2942_vm0, %v2941_v0  ;;  %2595 = vmatprep.subr.mxu1 %v2941_v0 }
 0x523   : > { %2588 = vmatmul.mubr.msk.f32.vlgmr.msra.gmra.mxu1 %vm363_vm2, %v1091_v61 }
 0x524   : > { %2597 = vmatprep.mubr.msk.f32.mxu1 %vm2942_vm0, %v2941_v0  ;;  %2596 = vmatpush3.msk.msra.mxu1 %vm699_vm4, %v1256_v63 }
 0x525   : > { %2605 = vmatprep.subr.mxu1 %v2941_v0 }
 0x531   : > { %1335 = vrot.lane.b32.xlu1 %v3145_v8, %s2953_s16 }
 0x535   : > { %1333 = vrot.lane.b32.xlu1 %v3149_v10, %s2954_s17  ;;  %s2473_s17 = sshll.u32 %s3018_s22, 7  ;;  %s2966_s22 = smov [#allocation8]  }
 0x5a9   : > { %v933_v1 = vpop.xlane.xlu1 %932 }
 0x5aa   : > { %2764 = vrcp.f32 %v933_v1 }
 0x5ad   : > { %v1336_v15 = vpop.permute.xlu1 %1335 }
 0x5b1   : > { %v1334_v18 = vpop.permute.xlu1 %1333 }
 0x5b7   : > { %v2765_v2 = vpop.eup %2764 }
 0x5df   : > { %v1008_v3 = vpop.f32.mrf.mxu1 }
 0x5e0   : > { %v1012_v4 = vmul.f32 %v2765_v2, %v1008_v3 }
 0x5e1   : > { %v2579_v5 = vpop.f32.mrf.mxu1 }
 0x5e2   : > { %2583 = vmatmul.mubr.msk.f32.vlgmr.msra.gmra.mxu0 %vm363_vm2, %v1012_v4 }
 0x5e3   : > { %v1164_v6 = vpop.f32.mrf.mxu1  ;;  %2592 = vmatprep.mubr.msk.f32.mxu0 %vm2942_vm0, %v2941_v0 }
 0x5e4   : > { %v1168_v7 = vsel %vm439_vm3, %v1164_v6, -inf }
 0x5e5   : > { %1169 = vmax.xlane.f32.xlu0 %v1168_v7  ;;  %v2589_v9 = vpop.f32.mrf.mxu1 }
 0x5fb   : > { %1179 = vrot.lane.b32.xlu0 %v3145_v8, %s2955_s24  ;;  %s268_s24 = scalar_lea.vmem [#allocation8], %s2425_s14 }
 0x66e   : > { %v1170_v11 = vpop.xlane.xlu0 %1169 }
 0x66f   : > { %v1171_v12 = vsub.f32 %v1164_v6, %v1170_v11 }
 0x671   : > { %v1172_v13 = vmul.f32 1.442695, %v1171_v12 }
 0x672   : > { %v1180_v14 = vpop.permute.xlu0 %1179 }
 0x673   : > { %2766 = vpow2.f32 %v1172_v13  ;;  %2591 = vmatpush3.msra.mxu0 %v1180_v14 }
 0x674   : > { %2600 = vmatprep.subr.mxu0 %v2941_v0 }
 0x680   : > { %v2767_v16 = vpop.eup %2766 }
 0x681   : > { %2593 = vmatmul.mubr.msk.f32.vlgmr.msra.gmra.mxu0 %vm439_vm3, %v2767_v16  ;;  %v1174_v17 = vsel %vm439_vm3, %v2767_v16, 0.0 }
 0x682   : > { %2601 = vmatpush3.xpose.msk.msra.mxu0 %vm363_vm2, %v1336_v15  ;;  %1175 = vadd.xlane.f32.xlu0 %v1174_v17 }
 0x683   : > { %2602 = vmatprep.mubr.msk.f32.mxu0 %vm2942_vm0, %v2941_v0  ;;  %2610 = vmatprep.subr.mxu0 %v2941_v0 }
 0x685   : > { %2603 = vmatmul.mubr.msk.f32.vlgmr.msra.gmra.mxu0 %vm363_vm2, %v1334_v18 }
 0x686   : > { %2612 = vmatprep.mubr.msk.f32.mxu0 %vm2942_vm0, %v2941_v0  ;;  %2611 = vmatpush3.msk.msra.mxu0 %vm699_vm4, %v358_v41 }
 0x687   : > { %2620 = vmatprep.subr.mxu0 %v2941_v0 }
 0x698   : > { %1422 = vrot.lane.b32.xlu0 %v3145_v8, %s2956_s26  ;;  %s2328_s26 = sshll.u32 %s268_s24, 4  ;;  %s2329_s26 = int_to_ptr.vmem [resolvable:$true] %s2328_s26 }
 0x69c   : > { %1576 = vrot.lane.b32.xlu0 %v3149_v10, %s2957_s8 }
 0x6a2   : > { %v1085_v19 = vpop.f32.mrf.mxu0 }
 0x6a3   : > { %v1089_v20 = vadd.f32 %v1085_v19, %v3198_v50  ;;  %v359_v19 = vld [vmem:[#allocation7 + $0x18] sm:$0xff] }
 0x6a4   : > { %v2584_v21 = vpop.f32.mrf.mxu0 }
 0x70b   : > { %v1176_v22 = vpop.xlane.xlu0 %1175 }
 0x70c   : > { %2768 = vrcp.f32 %v1176_v22 }
 0x70f   : > { %v1423_v27 = vpop.permute.xlu0 %1422 }
 0x713   : > { %v1577_v37 = vpop.permute.xlu0 %1576 }
 0x719   : > { %v2769_v23 = vpop.eup %2768 }
 0x741   : > { %v1251_v24 = vpop.f32.mrf.mxu0 }
 0x742   : > { %v1255_v25 = vmul.f32 %v2769_v23, %v1251_v24 }
 0x743   : > { %v2594_v26 = vpop.f32.mrf.mxu0 }
 0x744   : > { %2598 = vmatmul.mubr.msk.f32.vlgmr.msra.gmra.mxu1 %vm363_vm2, %v1255_v25 }
 0x745   : > { %2606 = vmatpush3.msra.mxu1 %v1423_v27  ;;  %v1407_v28 = vpop.f32.mrf.mxu0  ;;  %2607 = vmatprep.mubr.msk.f32.mxu1 %vm2942_vm0, %v2941_v0 }
 0x746   : > { %v1411_v29 = vsel %vm439_vm3, %v1407_v28, -inf  ;;  %2615 = vmatprep.subr.mxu1 %v2941_v0 }
 0x747   : > { %1412 = vmax.xlane.f32.xlu1 %v1411_v29  ;;  %v2604_v30 = vpop.f32.mrf.mxu0 }
 0x758   : > { %1578 = vrot.lane.b32.xlu1 %v3145_v8, %s2958_s10 }
 0x7d0   : > { %v1413_v31 = vpop.xlane.xlu1 %1412 }
 0x7d1   : > { %v1414_v32 = vsub.f32 %v1407_v28, %v1413_v31 }
 0x7d3   : > { %v1415_v33 = vmul.f32 1.442695, %v1414_v32 }
 0x7d4   : > { %v1579_v35 = vpop.permute.xlu1 %1578 }
 0x7d5   : > { %2770 = vpow2.f32 %v1415_v33 }
 0x7e2   : > { %v2771_v34 = vpop.eup %2770 }
 0x7e3   : > { %2608 = vmatmul.mubr.msk.f32.vlgmr.msra.gmra.mxu1 %vm439_vm3, %v2771_v34  ;;  %v1417_v36 = vsel %vm439_vm3, %v2771_v34, 0.0 }
 0x7e4   : > { %2616 = vmatpush3.xpose.msk.msra.mxu1 %vm363_vm2, %v1579_v35  ;;  %1418 = vadd.xlane.f32.xlu1 %v1417_v36 }
 0x7e5   : > { %2617 = vmatprep.mubr.msk.f32.mxu1 %vm2942_vm0, %v2941_v0  ;;  %2625 = vmatprep.subr.mxu1 %v2941_v0 }
 0x7e7   : > { %2618 = vmatmul.mubr.msk.f32.vlgmr.msra.gmra.mxu1 %vm363_vm2, %v1577_v37 }
 0x7e8   : > { %2627 = vmatprep.mubr.msk.f32.mxu1 %vm2942_vm0, %v2941_v0  ;;  %2626 = vmatpush3.msk.msra.mxu1 %vm699_vm4, %v1742_v42  ;;  %v2471_v42 = vld [vmem:[%s3344_s4] ss:$0 sm:$0xff] }
 0x7e9   : > { %2635 = vmatprep.subr.mxu1 %v2941_v0 }
 0x7f5   : > { %1821 = vrot.lane.b32.xlu1 %v3145_v8, %s2959_s11  ;;  %s2326_s11 = scalar_lea.hbm %s3345_s5, %s2473_s17 }
 0x7f9   : > { %1819 = vrot.lane.b32.xlu1 %v3149_v10, %s2960_s12  ;;  %s2315_s12 = scalar_lea.sflag [#allocation4], %s3115_s13 }
 0x804   : > { %v1328_v38 = vpop.f32.mrf.mxu1 }
 0x805   : > { %v1332_v39 = vadd.f32 %v1328_v38, %v1089_v20  ;;  %v2228_v20 = vrot.slane %v359_v19, 4 }
 0x806   : > { %v2599_v40 = vpop.f32.mrf.mxu1 }
 0x86d   : > { %v1419_v43 = vpop.xlane.xlu1 %1418 }
 0x86e   : > { %2772 = vrcp.f32 %v1419_v43 }
 0x871   : > { %v1822_v55 = vpop.permute.xlu1 %1821 }
 0x875   : > { %v1820_v58 = vpop.permute.xlu1 %1819 }
 0x87b   : > { %v2773_v44 = vpop.eup %2772 }
 0x8a3   : > { %v1494_v45 = vpop.f32.mrf.mxu1 }
 0x8a4   : > { %v1498_v46 = vmul.f32 %v2773_v44, %v1494_v45 }
 0x8a5   : > { %v2609_v47 = vpop.f32.mrf.mxu1 }
 0x8a6   : > { %2613 = vmatmul.mubr.msk.f32.vlgmr.msra.gmra.mxu0 %vm363_vm2, %v1498_v46 }
 0x8a7   : > { %v1650_v48 = vpop.f32.mrf.mxu1  ;;  %2622 = vmatprep.mubr.msk.f32.mxu0 %vm2942_vm0, %v2941_v0 }
 0x8a8   : > { %v1654_v49 = vsel %vm439_vm3, %v1650_v48, -inf }
 0x8a9   : > { %1655 = vmax.xlane.f32.xlu0 %v1654_v49  ;;  %v2619_v50 = vpop.f32.mrf.mxu1 }
 0x8bf   : > { %1665 = vrot.lane.b32.xlu0 %v3145_v8, %s2961_s30  ;;  %s2866_s30 = scalar_lea.vmem %s2329_s26, 128 }
 0x8c0   : > { %p2867_p11 = scmp.ne.s32.totalorder %s2329_s26, %s2866_s30 }
 0x8c2   : > { %p2868_p1 = pnand %p2867_p11, %p3361_p0 }
 0x8c4   : > { %p2869_p2 = pneg %p2868_p1 }
 0x932   : > { %v1656_v51 = vpop.xlane.xlu0 %1655 }
 0x933   : > { %v1657_v52 = vsub.f32 %v1650_v48, %v1656_v51 }
 0x935   : > { %v1658_v53 = vmul.f32 1.442695, %v1657_v52 }
 0x936   : > { %v1666_v54 = vpop.permute.xlu0 %1665 }
 0x937   : > { %2774 = vpow2.f32 %v1658_v53  ;;  %2621 = vmatpush3.msra.mxu0 %v1666_v54 }
 0x938   : > { %2630 = vmatprep.subr.mxu0 %v2941_v0 }
 0x944   : > { %v2775_v56 = vpop.eup %2774 }
 0x945   : > { %2623 = vmatmul.mubr.msk.f32.vlgmr.msra.gmra.mxu0 %vm439_vm3, %v2775_v56  ;;  %v1660_v57 = vsel %vm439_vm3, %v2775_v56, 0.0 }
 0x946   : > { %2631 = vmatpush3.xpose.msk.msra.mxu0 %vm363_vm2, %v1822_v55  ;;  %1661 = vadd.xlane.f32.xlu0 %v1660_v57 }
 0x947   : > { %2632 = vmatprep.mubr.msk.f32.mxu0 %vm2942_vm0, %v2941_v0  ;;  %2640 = vmatprep.subr.mxu0 %v2941_v0 }
 0x949   : > { %2633 = vmatmul.mubr.msk.f32.vlgmr.msra.gmra.mxu0 %vm363_vm2, %v1820_v58 }
 0x94a   : > { %2642 = vmatprep.mubr.msk.f32.mxu0 %vm2942_vm0, %v2941_v0  ;;  %2641 = vmatpush3.msk.msra.mxu0 %vm699_vm4, %v359_v19 }
 0x94b   : > { %2650 = vmatprep.subr.mxu0 %v2941_v0 }
 0x95c   : > { %1908 = vrot.lane.b32.xlu0 %v3145_v8, %s2962_s29  ;;  %s2870_s29 = sshll.u32 %s2966_s22, 4  ;;  %s2871_s29 = int_to_ptr.vmem [resolvable:$false] %s2870_s29 }
 0x95d   : > { %s2872_s14 = scalar_lea.vmem %s2871_s29, 256  ;;  %p2873_p6 = scmp.lt.s32.totalorder %s2329_s26, %s2871_s29 }
 0x95e   : > { %p2874_p12 = scmp.lt.s32.totalorder %s2872_s14, %s2866_s30 }
 0x960   : > { %2062 = vrot.lane.b32.xlu0 %v3149_v10, %s2963_s6  ;;  %p2875_p7 = por %p2874_p12, %p2873_p6 }
 0x962   : > { %p2876_p9 = pnand %p2875_p7, %p2869_p2 }
 0x966   : > { %v1571_v59 = vpop.f32.mrf.mxu0 }
 0x967   : > { %v1575_v60 = vadd.f32 %v1571_v59, %v1332_v39 }
 0x968   : > { %v2614_v61 = vpop.f32.mrf.mxu0 }
 0x9cf   : > { %v1662_v62 = vpop.xlane.xlu0 %1661 }
 0x9d0   : > { %2776 = vrcp.f32 %v1662_v62 }
 0x9d3   : > { %v1909_v4 = vpop.permute.xlu0 %1908 }
 0x9d7   : > { %v2063_v15 = vpop.permute.xlu0 %2062 }
 0x9dd   : > { %v2777_v63 = vpop.eup %2776 }
 0xa05   : > { %v1737_v1 = vpop.f32.mrf.mxu0 }
 0xa06   : > { %v1741_v2 = vmul.f32 %v2777_v63, %v1737_v1 }
 0xa07   : > { %v2624_v3 = vpop.f32.mrf.mxu0 }
 0xa08   : > { %2628 = vmatmul.mubr.msk.f32.vlgmr.msra.gmra.mxu1 %vm363_vm2, %v1741_v2 }
 0xa09   : > { %2636 = vmatpush3.msra.mxu1 %v1909_v4  ;;  %v1893_v5 = vpop.f32.mrf.mxu0  ;;  %2637 = vmatprep.mubr.msk.f32.mxu1 %vm2942_vm0, %v2941_v0 }
 0xa0a   : > { %v1897_v6 = vsel %vm439_vm3, %v1893_v5, -inf  ;;  %2645 = vmatprep.subr.mxu1 %v2941_v0 }
 0xa0b   : > { %1898 = vmax.xlane.f32.xlu1 %v1897_v6  ;;  %v2634_v10 = vpop.f32.mrf.mxu0 }
 0xa1c   : > { %2064 = vrot.lane.b32.xlu1 %v3145_v8, %s2964_s28 }
 0xa94   : > { %v1899_v7 = vpop.xlane.xlu1 %1898 }
 0xa95   : > { %v1900_v9 = vsub.f32 %v1893_v5, %v1899_v7 }
 0xa97   : > { %v1901_v11 = vmul.f32 1.442695, %v1900_v9 }
 0xa98   : > { %v2065_v13 = vpop.permute.xlu1 %2064 }
 0xa99   : > { %2778 = vpow2.f32 %v1901_v11 }
 0xaa6   : > { %v2779_v12 = vpop.eup %2778 }
 0xaa7   : > { %2638 = vmatmul.mubr.msk.f32.vlgmr.msra.gmra.mxu1 %vm439_vm3, %v2779_v12  ;;  %v1903_v14 = vsel %vm439_vm3, %v2779_v12, 0.0 }
 0xaa8   : > { %2646 = vmatpush3.xpose.msk.msra.mxu1 %vm363_vm2, %v2065_v13  ;;  %1904 = vadd.xlane.f32.xlu1 %v1903_v14 }
 0xaa9   : > { %2647 = vmatprep.mubr.msk.f32.mxu1 %vm2942_vm0, %v2941_v0  ;;  %2655 = vmatprep.subr.mxu1 %v2941_v0 }
 0xaab   : > { %2648 = vmatmul.mubr.msk.f32.vlgmr.msra.gmra.mxu1 %vm363_vm2, %v2063_v15 }
 0xaac   : > { %2657 = vmatprep.mubr.msk.f32.mxu1 %vm2942_vm0, %v2941_v0  ;;  %2656 = vmatpush3.msk.msra.mxu1 %vm699_vm4, %v2228_v20 }
 0xac8   : > { %v1814_v16 = vpop.f32.mrf.mxu1 }
 0xac9   : > { %v1818_v17 = vadd.f32 %v1814_v16, %v1575_v60 }
 0xaca   : > { %v2629_v18 = vpop.f32.mrf.mxu1 }
 0xb31   : > { %v1905_v21 = vpop.xlane.xlu1 %1904 }
 0xb32   : > { %2780 = vrcp.f32 %v1905_v21 }
 0xb3f   : > { %v2781_v22 = vpop.eup %2780 }
 0xb67   : > { %v1980_v23 = vpop.f32.mrf.mxu1 }
 0xb68   : > { %v1984_v24 = vmul.f32 %v2781_v22, %v1980_v23 }
 0xb69   : > { %v2639_v25 = vpop.f32.mrf.mxu1 }
 0xb6a   : > { %2643 = vmatmul.mubr.msk.f32.vlgmr.msra.gmra.mxu0 %vm363_vm2, %v1984_v24 }
 0xb6b   : > { %v2136_v26 = vpop.f32.mrf.mxu1  ;;  %2652 = vmatprep.mubr.msk.f32.mxu0 %vm2942_vm0, %v2941_v0 }
 0xb6c   : > { %v2140_v27 = vsel %vm439_vm3, %v2136_v26, -inf }
 0xb6d   : > { %2141 = vmax.xlane.f32.xlu0 %v2140_v27  ;;  %v2649_v28 = vpop.f32.mrf.mxu1 }
 0xb83   : > { %2151 = vrot.lane.b32.xlu0 %v3145_v8, %s2965_s7 }
 0xbf6   : > { %v2142_v29 = vpop.xlane.xlu0 %2141 }
 0xbf7   : > { %v2143_v30 = vsub.f32 %v2136_v26, %v2142_v29 }
 0xbf9   : > { %v2144_v31 = vmul.f32 1.442695, %v2143_v30 }
 0xbfa   : > { %v2152_v32 = vpop.permute.xlu0 %2151 }
 0xbfb   : > { %2782 = vpow2.f32 %v2144_v31  ;;  %2651 = vmatpush3.msra.mxu0 %v2152_v32 }
 0xc08   : > { %v2783_v33 = vpop.eup %2782 }
 0xc09   : > { %2653 = vmatmul.mubr.msk.f32.vlgmr.msra.gmra.mxu0 %vm439_vm3, %v2783_v33  ;;  %v2146_v0 = vsel %vm439_vm3, %v2783_v33, 0.0 }
 0xc0a   : > { %2147 = vadd.xlane.f32.xlu1 %v2146_v0 }
 0xc2a   : > { %v2057_v34 = vpop.f32.mrf.mxu0 }
 0xc2b   : > { %v2061_v35 = vadd.f32 %v2057_v34, %v1818_v17 }
 0xc2c   : > { %v2644_v36 = vpop.f32.mrf.mxu0 }
 0xc93   : > { %v2148_v37 = vpop.xlane.xlu1 %2147 }
 0xc94   : > { %2784 = vrcp.f32 %v2148_v37 }
 0xca1   : > { %v2785_v8 = vpop.eup %2784 }
 0xcc9   : > { %v2223_v38 = vpop.f32.mrf.mxu0 }
 0xcca   : > { %v2227_v39 = vmul.f32 %v2785_v8, %v2223_v38 }
 0xccb   : > { %v2654_v40 = vpop.f32.mrf.mxu0 }
 0xccc   : > { %2658 = vmatmul.mubr.msk.f32.vlgmr.msra.gmra.mxu1 %vm363_vm2, %v2227_v39 }
 0xd8c   : > { %v2300_v41 = vpop.f32.mrf.mxu1 }
 0xd8d   : > { %v2304_v43 = vadd.f32 %v2300_v41, %v2061_v35 }
 0xd8e   : > { %v2659_v44 = vpop.f32.mrf.mxu1 }
 0xd8f   : > { %v2312_v45 = vadd.f32 %v2471_v42, %v2304_v43 }
 0xd91   : > { %2313 = vst.msk [vmem:[%s268_s24] sm:$0xff] %vm281_vm1, %v2312_v45 }
 0xd92   : > { %2879 = shalt.err (!%p2876_p9)
}
 0xd93   : > { %s2880_s6 = scalar_lea.hbm %s2326_s11, 128  ;;  %s2884_s7 = scalar_lea.hbm %s3345_s5, 256 }
 0xd94   : > { %p2881_p13 = scmp.ne.s32.totalorder %s2326_s11, %s2880_s6  ;;  %p2885_p4 = scmp.lt.s32.totalorder %s2326_s11, %s3345_s5 }
 0xd95   : > { %p2886_p8 = scmp.lt.s32.totalorder %s2884_s7, %s2880_s6 }
 0xd96   : > { %p2882_p5 = pnand %p2881_p13, %p3361_p0 }
 0xd97   : > { %p2887_p3 = por %p2886_p8, %p2885_p4 }
 0xd98   : > { %p2883_p10 = pneg %p2882_p5 }
 0xd9a   : > { %p2888_p11 = pnand %p2887_p3, %p2883_p10 }
 0xd9c   : > { %2891 = shalt.err (!%p2888_p11)
}
 0xd9d   : > { %2670 = dma.vmem_to_hbm [thread:$0]  (%p3361_p0), %s2329_s26, 128, %s2326_s11, %s2315_s12  }
 0xd9e PF: > { %s2340_s17 = sand.u32 1, %s2922_s18   ;;  %p3362_p1 = scmp.ne.s32.totalorder %s3351_s25, 0 }
 0xd9f   : > { %p3363_p2 = scmp.ge.s32.totalorder %s2934_s21, 2  ;;  %s2341_s24 = scalar_lea.sflag [#allocation4], %s2340_s17 }
 0xda1   : > { %p2684_p6 = pnand %p3363_p2, %p3362_p1 }
 0xda3   : > { %p2685_p12 = pneg %p2684_p6 }
 0xda5   : > { %2917 = dma.done.wait (%p2685_p12), %s2341_s24, 128  }
 0xda6   : > { %2919 = vsyncadd (%p2685_p12), %s2341_s24, 4294967168  ;;  %p19_p7 = scmp.ge.s32.totalorder %s3069_s15, 4   ;;  %s3364_s18 = smov %s2926_s19 }
 0xda7   : > { %s3365_s19 = smov %s2930_s20  ;;  %s3366_s20 = smov %s3085_s27 }
 0xda8   : > { %s3367_s21 = smov %s3069_s15  ;;  %21 = sbr.rel (!%p19_p7) target bundleno = 6 (0x6), region = 93 }
 0xdad   :  { %2346 = vsyncpa [#allocation3], 1 }
 0xdae   :  { %2348 = vsyncpa [#allocation3 + $0x1], 1 }
 0xdaf   :  { %2349 = vsyncpa [#allocation6], 1 }
 0xdb0   :  { %2350 = vsyncpa [#allocation4], 1 }
 0xdb1   :  { %2352 = vsyncpa [#allocation4 + $0x1], 1 }

// kernel: tpu_custom_call.1
= control target key start
LH: loop header
LB: loop body
LE: loop exit
PB: predicated region body
PF: predicated region fallthrough
CT: control target
= control target key end

     0   :  { %10 = vsyncpa [#allocation3], 0  ;;  %s3340_s0 = inlined_call_operand.hbm [shape: f32[2,8,32], index: 0, kind: input, shape index: {}]   ;;  %s3341_s1 = inlined_call_operand.hbm [shape: f32[32,96], index: 1, kind: input, shape index: {}]   ;;  %s3342_s2 = inlined_call_operand.vmem [shape: f32[1,96], index: 2, kind: input, shape index: {}]   ;;  %s3343_s3 = inlined_call_operand.hbm [shape: f32[32,32], index: 3, kind: input, shape index: {}]   ;;  %s3344_s4 = inlined_call_operand.vmem [shape: f32[1,32], index: 4, kind: input, shape index: {}]   ;;  %s3345_s5 = inlined_call_operand.hbm [shape: f32[2,8,32], index: 5, kind: output, shape index: {}]  }
   0x1   :  { %12 = vsyncpa [#allocation3 + $0x1], 0 }
   0x2   :  { %13 = vsyncpa [#allocation6], 0 }
   0x3   :  { %14 = vsyncpa [#allocation4], 0 }
   0x4   :  { %16 = vsyncpa [#allocation4 + $0x1], 0  ;;  %s2997_s18 = smov 0   ;;  %s2999_s19 = smov 0  }
   0x5   :  { %s3001_s20 = smov 0   ;;  %s3003_s21 = smov 0  }
   0x6 LB: > { %s3018_s22 = sadd.s32 4294967295, %s2934_s21   ;;  %s2417_s23 = sadd.s32 4294967294, %s2934_s21   ;;  %s2934_s21 = sphi %s3003_s21, %s3367_s21   ;;  %s2930_s20 = sphi %s3001_s20, %s3366_s20   ;;  %s2926_s19 = sphi %s2999_s19, %s3365_s19   ;;  %s2922_s18 = sphi %s2997_s18, %s3364_s18  }
   0x7   : > { %p42_p0 = scmp.ne.s32.totalorder %s2926_s19, %s2922_s18  ;;  %p3346_p1 = scmp.eq.s32.totalorder %s3018_s22, 0 }
   0x8   : > { %p156_p3 = scmp.eq.s32.totalorder %s2417_s23, 1  ;;  %p2418_p5 = scmp.ge.s32.totalorder %s2934_s21, 1 }
   0x9   : > { %p3027_p4 = por %p3346_p1, %p42_p0  ;;  %p163_p7 = scmp.lt.s32.totalorder %s2934_s21, 3 }
   0xa   : > { %p3032_p6 = por %p156_p3, %p42_p0  ;;  %s2936_s27 = smov [#allocation5]  }
   0xb   : > { %s3350_s24 = scalar_select %p3027_p4, 1, 0 }
   0xc   : > { %s3351_s25 = scalar_select %p3032_p6, 1, 0 }
   0xd   : > { %p3037_p8 = pnand %p2418_p5, %p163_p7  ;;  %s175_s28 = sshll.u32 %s2936_s27, 4  ;;  %s176_s28 = int_to_ptr.vmem [resolvable:$true] %s175_s28 }
   0xe   : > { %s2937_s30 = smov [#allocation7]   ;;  %s2797_s7 = scalar_lea.vmem %s176_s28, 512 }
   0xf   : > { %s3352_s26 = scalar_select %p3037_p8, 1, 0 }
  0x10   : > { %p2672_p9 = pneg %p3037_p8  ;;  %s191_s6 = sshll.u32 %s2937_s30, 4  ;;  %s192_s6 = int_to_ptr.vmem [resolvable:$true] %s191_s6 }
  0x11   : > { %p2798_p13 = scmp.ne.s32.totalorder %s176_s28, %s2797_s7  ;;  %p2805_p5 = scmp.lt.s32.totalorder %s176_s28, %s176_s28 }
  0x12   : > { %p3046_p11 = pnand %p2672_p9, %p3346_p1  ;;  %p2806_p7 = scmp.lt.s32.totalorder %s2797_s7, %s2797_s7 }
  0x14   : > { %p2788_p12 = pneg %p3046_p11  ;;  %p2807_p10 = por %p2806_p7, %p2805_p5 }
  0x16   : > { %p2800_p0 = pnand %p2798_p13, %p2788_p12 }
  0x18   : > { %p2801_p3 = pneg %p2800_p0 }
  0x1a   : > { %p2808_p9 = pnand %p2807_p10, %p2801_p3 }
  0x1c   : > { %2811 = shalt.err (!%p2808_p9)
}
  0x1d   : > { %s2938_s8 = smov 128   ;;  %s2939_s9 = smov 8  }
  0x1e   : > { %2675 = dma.hbm_to_vmem [thread:$0]  (!%p3046_p11), %s3341_s1, 512, %s176_s28, [#allocation6], %s2938_s8, %s2938_s8, %s2939_s9  }
  0x1f   : > { %s2823_s12 = scalar_lea.vmem %s192_s6, 512  ;;  %p2831_p2 = scmp.lt.s32.totalorder %s192_s6, %s192_s6 }
  0x20   : > { %p2824_p1 = scmp.ne.s32.totalorder %s192_s6, %s2823_s12  ;;  %p2832_p6 = scmp.lt.s32.totalorder %s2823_s12, %s2823_s12 }
  0x22   : > { %p2826_p13 = pnand %p2824_p1, %p2788_p12  ;;  %p2833_p5 = por %p2832_p6, %p2831_p2 }
  0x24   : > { %p2827_p0 = pneg %p2826_p13 }
  0x26   : > { %p2834_p10 = pnand %p2833_p5, %p2827_p0 }
  0x28   : > { %2837 = shalt.err (!%p2834_p10)
}
  0x29   : > { %2678 = dma.hbm_to_vmem [thread:$0]  (!%p3046_p11), %s3343_s3, 512, %s192_s6, [#allocation6], %s2938_s8, %s2938_s8, %s2939_s9  }
  0x2a   : > { %s3069_s15 = sadd.s32 1, %s2934_s21   ;;  %s29_s16 = sadd.s32 1, %s2930_s20 }
  0x2b   : > { %s26_s17 = ssub.s32 %s2934_s21, %s3069_s15  ;;  %p36_p1 = scmp.ne.s32.totalorder %s2930_s20, %s2926_s19 }
  0x2c   : > { %p27_p2 = scmp.eq.s32.totalorder %s26_s17, 0  ;;  %p37_p6 = scmp.eq.s32.totalorder %s2934_s21, 0 }
  0x2d   : > { %p3354_p12 = scmp.eq.s32.totalorder %s3018_s22, 1  ;;  %p2689_p7 = scmp.lt.s32.totalorder %s2934_s21, 2 }
  0x2e   : > { %s3085_s27 = scalar_select %p27_p2, %s2930_s20, %s29_s16  }
  0x2f   : > { %p3079_p3 = por %p3354_p12, %p36_p1  ;;  %p38_p9 = por %p37_p6, %p36_p1 }
  0x30   : > { %s208_s28 = sand.u32 1, %s2930_s20   ;;  %s2423_s30 = sshll.u32 %s2934_s21, 7 }
  0x31   : > { %s3355_s23 = scalar_select %p3079_p3, 1, 0 }
  0x32   : > { %s2422_s29 = sshll.u32 %s208_s28, 3  ;;  %s3092_s8 = scalar_lea.hbm %s3340_s0, %s2423_s30 }
  0x33   : > { %s212_s9 = scalar_lea.vmem [#allocation2], %s2422_s29  ;;  %p3094_p11 = pnand %p2689_p7, %p38_p9 }
  0x34   : > { %s219_s10 = sshll.u32 %s212_s9, 4  ;;  %s209_s12 = scalar_lea.sflag [#allocation3], %s208_s28  ;;  %s220_s10 = int_to_ptr.vmem [resolvable:$true] %s219_s10 }
  0x35   : > { %s2838_s13 = scalar_lea.hbm %s3092_s8, 128  ;;  %p2840_p0 = pneg %p3094_p11 }
  0x36   : > { %p2839_p13 = scmp.ne.s32.totalorder %s3092_s8, %s2838_s13  ;;  %s2843_s17 = scalar_lea.hbm %s3340_s0, 256 }
  0x37   : > { %p2844_p1 = scmp.lt.s32.totalorder %s3092_s8, %s3340_s0  ;;  %p2845_p2 = scmp.lt.s32.totalorder %s2843_s17, %s2838_s13 }
  0x38   : > { %p2841_p5 = pnand %p2840_p0, %p2839_p13 }
  0x39   : > { %p2846_p6 = por %p2845_p2, %p2844_p1 }
  0x3a   : > { %p2842_p10 = pneg %p2841_p5 }
  0x3c   : > { %p2847_p12 = pnand %p2846_p6, %p2842_p10 }
  0x3e   : > { %2850 = shalt.err (!%p2847_p12)
}
  0x3f   : > { %s2851_s6 = scalar_lea.vmem %s220_s10, 128  ;;  %s2940_s28 = smov [#allocation2]  }
  0x40   : > { %p2852_p7 = scmp.ne.s32.totalorder %s220_s10, %s2851_s6  ;;  %s2856_s7 = sshll.u32 %s2940_s28, 4  ;;  %s2857_s7 = int_to_ptr.vmem [resolvable:$false] %s2856_s7 }
  0x41   : > { %s2858_s9 = scalar_lea.vmem %s2857_s7, 256  ;;  %p2859_p13 = scmp.lt.s32.totalorder %s220_s10, %s2857_s7 }
  0x42   : > { %p2854_p9 = pnand %p2852_p7, %p2840_p0  ;;  %p2860_p5 = scmp.lt.s32.totalorder %s2858_s9, %s2851_s6 }
  0x44   : > { %p2855_p3 = pneg %p2854_p9  ;;  %p2861_p4 = por %p2860_p5, %p2859_p13 }
  0x46   : > { %p2862_p8 = pnand %p2861_p4, %p2855_p3 }
  0x48   : > { %2865 = shalt.err (!%p2862_p8)
}
  0x49   : > { %2682 = dma.hbm_to_vmem [thread:$0]  (!%p3094_p11), %s3092_s8, 128, %s220_s10, %s209_s12  }
  0x4a   : > { %p3357_p10 = scmp.ne.s32.totalorder %s3352_s26, 0 }
  0x4b   : > { %s3115_s13 = sand.u32 (!%p3357_p10), 1, %s2926_s19   ;;  %p3358_p4 = scmp.ne.s32.totalorder (!%p3357_p10), %s3350_s24, 0 }
  0x4c   : > { %228 = sbr.rel (%p3357_p10) target bundleno = 3486 (0xd9e), region = 40  ;;  %s2425_s14 = sshll.u32 (!%p3357_p10), %s3115_s13, 3 }
  0x4d   : > { %s231_s16 = scalar_lea.sflag (!%p3357_p10), [#allocation3], %s3115_s13  ;;  %s234_s17 = scalar_lea.vmem (!%p3357_p10), [#allocation2], %s2425_s14 }
  0x51   : > { %2909 = dma.done.wait (%p3358_p4), %s231_s16, 128  }
  0x52   : > { %2911 = vsyncadd (%p3358_p4), %s231_s16, 4294967168  ;;  %p3359_p8 = scmp.eq.s32.totalorder %s3018_s22, 0 }
  0x54   : > { %2913 = dma.done.wait (%p3359_p8), [#allocation6], 1024   ;;  %p3360_p3 = pmov %p3359_p8 }
  0x55   : > { %v2941_v0 = vmov 0.0   ;;  %vm2942_vm0 = vmmov 0   ;;  %v273_v1 = vld [vmem:[#allocation5 + $0x18] sm:$0xff]  ;;  %v272_v2 = vld [vmem:[#allocation5 + $0x10] sm:$0xff]  ;;  %v271_v3 = vld [vmem:[#allocation5 + $0x8] sm:$0xff]  ;;  %vm281_vm1 = vcmask 261120  }
  0x56   : > { %2915 = vsyncadd (%p3360_p3), [#allocation6], 4294966272  ;;  %2529 = vmatprep.subr.mxu0 %v2941_v0  ;;  %2537 = vmatprep.mubr.msk.f32.mxu0 %vm2942_vm0, %v2941_v0  ;;  %v270_v4 = vld [vmem:[#allocation5] sm:$0xff]  ;;  %v269_v5 = vld [vmem:[%s234_s17] sm:$0xff]  ;;  %s2943_s8 = smov 96   ;;  %s2944_s10 = smov 124  }
  0x57   : > { %2540 = vmatprep.subr.mxu1 %v2941_v0  ;;  %2542 = vmatprep.mubr.msk.f32.mxu1 %vm2942_vm0, %v2941_v0  ;;  %v2429_v6 = vld [vmem:[%s3342_s2] ss:$0 sm:$0xff]  ;;  %s2945_s11 = smov 92   ;;  %vm363_vm2 = vcmask 31744   ;;  %vm439_vm3 = vcmask 64512   ;;  %s2946_s12 = smov 60  }
  0x58   : > { %2530 = vmatpush3.msra.mxu0 %v273_v1  ;;  %s2947_s30 = smov 64   ;;  %s2948_s29 = smov 88   ;;  %v356_v32 = vld [vmem:[#allocation7] sm:$0xff]  ;;  %vm699_vm4 = vcmask 1043456   ;;  %v357_v62 = vld [vmem:[#allocation7 + $0x8] sm:$0xff] }
  0x59   : > { %2531 = vmatprep.subr.mxu0 %v2941_v0  ;;  %s2949_s6 = smov 120   ;;  %s2950_s28 = smov 56   ;;  %v695_v33 = vrot.slane %v356_v32, 4  ;;  %v1256_v63 = vrot.slane %v357_v62, 4 }
  0x5a   : > { %2532 = vmatpush3.msra.mxu0 %v272_v2  ;;  %s2951_s7 = smov 84   ;;  %s2952_s9 = smov 116  }
  0x5b   : > { %2533 = vmatprep.subr.mxu0 %v2941_v0  ;;  %s2953_s16 = smov 80   ;;  %s2954_s17 = smov 112  }
  0x5c   : > { %2534 = vmatpush3.msra.mxu0 %v271_v3  ;;  %s2955_s24 = smov 52   ;;  %s2956_s26 = smov 48  }
  0x5d   : > { %2535 = vmatprep.subr.mxu0 %v2941_v0  ;;  %p3361_p0 = scmp.ne.s32.totalorder %s3355_s23, 0 }
  0x5e   : > { %2536 = vmatpush3.msra.mxu0 %v270_v4 }
  0x5f   : > { %2538 = vmatmul.mubr.msk.f32.vlgmr.msra.gmra.mxu0 %vm281_vm1, %v269_v5  ;;  %2550 = vmatprep.subr.mxu0 %v2941_v0 }
  0x60   : > { %2552 = vmatprep.mubr.msk.f32.mxu0 %vm2942_vm0, %v2941_v0 }
 0x11f   : > { %v351_v7 = vpop.f32.mrf.mxu0 }
 0x120   : > { %v3145_v8 = vadd.f32 %v2429_v6, %v351_v7 }
 0x121   : > { %v2539_v9 = vpop.f32.mrf.mxu0 }
 0x122   : > { %361 = vrot.lane.b32.xlu0 %v3145_v8, %s2943_s8  ;;  %v3149_v10 = vmul.f32 0.5, %v3145_v8  ;;  %s2957_s8 = smov 108  }
 0x124   : > { %528 = vrot.lane.b32.xlu1 %v3149_v10, %s2944_s10  ;;  %s2958_s10 = smov 76  }
 0x126   : > { %530 = vrot.lane.b32.xlu0 %v3145_v8, %s2945_s11  ;;  %s2959_s11 = smov 72  }
 0x194   : > { %v362_v11 = vpop.permute.xlu0 %361 }
 0x195   : > { %2541 = vmatpush3.xpose.msk.msra.mxu1 %vm363_vm2, %v362_v11 }
 0x196   : > { %2545 = vmatprep.subr.mxu1 %v2941_v0  ;;  %v529_v13 = vpop.permute.xlu1 %528 }
 0x198   : > { %v531_v12 = vpop.permute.xlu0 %530  ;;  %2543 = vmatmul.mubr.msk.f32.vlgmr.msra.gmra.mxu1 %vm363_vm2, %v3149_v10 }
 0x199   : > { %2551 = vmatpush3.xpose.msk.msra.mxu0 %vm363_vm2, %v531_v12  ;;  %2547 = vmatprep.mubr.msk.f32.mxu1 %vm2942_vm0, %v2941_v0 }
 0x19a   : > { %2560 = vmatprep.subr.mxu0 %v2941_v0 }
 0x19c   : > { %2553 = vmatmul.mubr.msk.f32.vlgmr.msra.gmra.mxu0 %vm363_vm2, %v529_v13 }
 0x19d   : > { %2562 = vmatprep.mubr.msk.f32.mxu0 %vm2942_vm0, %v2941_v0  ;;  %2561 = vmatpush3.msk.msra.mxu0 %vm699_vm4, %v695_v33 }
 0x19e   : > { %2570 = vmatprep.subr.mxu0 %v2941_v0 }
 0x258   : > { %v435_v14 = vpop.f32.mrf.mxu1 }
 0x259   : > { %v440_v15 = vsel %vm439_vm3, %v435_v14, -inf }
 0x25a   : > { %441 = vmax.xlane.f32.xlu1 %v440_v15  ;;  %v2544_v16 = vpop.f32.mrf.mxu1 }
 0x25c   : > { %v602_v17 = vpop.f32.mrf.mxu0 }
 0x25d   : > { %v606_v18 = vsel %vm439_vm3, %v602_v17, -inf }
 0x25e   : > { %607 = vmax.xlane.f32.xlu0 %v606_v18  ;;  %v2554_v19 = vpop.f32.mrf.mxu0 }
 0x26b   : > { %617 = vrot.lane.b32.xlu1 %v3145_v8, %s2946_s12  ;;  %s2960_s12 = smov 104  }
 0x274   : > { %451 = vrot.lane.b32.xlu0 %v3145_v8, %s2947_s30  ;;  %s2961_s30 = smov 44  }
 0x278   : > { %849 = vrot.lane.b32.xlu0 %v3145_v8, %s2948_s29  ;;  %s2962_s29 = smov 40  }
 0x27c   : > { %847 = vrot.lane.b32.xlu0 %v3149_v10, %s2949_s6  ;;  %s2963_s6 = smov 100  }
 0x2e3   : > { %v442_v20 = vpop.xlane.xlu1 %441 }
 0x2e4   : > { %v443_v21 = vsub.f32 %v435_v14, %v442_v20 }
 0x2e6   : > { %v444_v22 = vmul.f32 1.442695, %v443_v21 }
 0x2e7   : > { %v608_v23 = vpop.xlane.xlu0 %607  ;;  %v618_v28 = vpop.permute.xlu1 %617 }
 0x2e8   : > { %2754 = vpow2.f32 %v444_v22  ;;  %v609_v24 = vsub.f32 %v602_v17, %v608_v23 }
 0x2ea   : > { %v610_v25 = vmul.f32 1.442695, %v609_v24 }
 0x2eb   : > { %v452_v26 = vpop.permute.xlu0 %451 }
 0x2ec   : > { %2756 = vpow2.f32 %v610_v25  ;;  %2546 = vmatpush3.msra.mxu1 %v452_v26 }
 0x2ed   : > { %2555 = vmatprep.subr.mxu1 %v2941_v0 }
 0x2ef   : > { %v850_v34 = vpop.permute.xlu0 %849 }
 0x2f3   : > { %v848_v35 = vpop.permute.xlu0 %847 }
 0x2f5   : > { %v2755_v27 = vpop.eup %2754 }
 0x2f6   : > { %2548 = vmatmul.mubr.msk.f32.vlgmr.msra.gmra.mxu1 %vm439_vm3, %v2755_v27  ;;  %v446_v29 = vsel %vm439_vm3, %v2755_v27, 0.0 }
 0x2f7   : > { %2556 = vmatpush3.msra.mxu1 %v618_v28  ;;  %447 = vadd.xlane.f32.xlu0 %v446_v29 }
 0x2f8   : > { %2557 = vmatprep.mubr.msk.f32.mxu1 %vm2942_vm0, %v2941_v0  ;;  %2565 = vmatprep.subr.mxu1 %v2941_v0 }
 0x2f9   : > { %v2757_v30 = vpop.eup %2756 }
 0x2fa   : > { %2558 = vmatmul.mubr.msk.f32.vlgmr.msra.gmra.mxu1 %vm439_vm3, %v2757_v30  ;;  %v612_v31 = vsel %vm439_vm3, %v2757_v30, 0.0 }
 0x2fb   : > { %613 = vadd.xlane.f32.xlu1 %v612_v31  ;;  %2567 = vmatprep.mubr.msk.f32.mxu1 %vm2942_vm0, %v2941_v0 }
 0x2fc   : > { %2566 = vmatpush3.msk.msra.mxu1 %vm699_vm4, %v356_v32 }
 0x2fd   : > { %2575 = vmatprep.subr.mxu1 %v2941_v0 }
 0x30c   : > { %936 = vrot.lane.b32.xlu1 %v3145_v8, %s2950_s28  ;;  %s2964_s28 = smov 68  }
 0x30d   : > { %1092 = vrot.lane.b32.xlu0 %v3145_v8, %s2951_s7  ;;  %s2965_s7 = smov 36  }
 0x380   : > { %v448_v36 = vpop.xlane.xlu0 %447 }
 0x381   : > { %2758 = vrcp.f32 %v448_v36 }
 0x384   : > { %v614_v37 = vpop.xlane.xlu1 %613  ;;  %v1093_v59 = vpop.permute.xlu0 %1092 }
 0x385   : > { %2760 = vrcp.f32 %v614_v37 }
 0x388   : > { %v937_v42 = vpop.permute.xlu1 %936 }
 0x38e   : > { %v2759_v38 = vpop.eup %2758 }
 0x392   : > { %v2761_v43 = vpop.eup %2760 }
 0x3b6   : > { %v523_v39 = vpop.f32.mrf.mxu1 }
 0x3b7   : > { %v527_v40 = vmul.f32 %v2759_v38, %v523_v39 }
 0x3b8   : > { %v2549_v41 = vpop.f32.mrf.mxu1 }
 0x3b9   : > { %2568 = vmatmul.mubr.msk.f32.vlgmr.msra.gmra.mxu1 %vm363_vm2, %v527_v40  ;;  %v358_v41 = vld [vmem:[#allocation7 + $0x10] sm:$0xff] }
 0x3ba   : > { %2576 = vmatpush3.msra.mxu1 %v937_v42  ;;  %v689_v44 = vpop.f32.mrf.mxu1  ;;  %2577 = vmatprep.mubr.msk.f32.mxu1 %vm2942_vm0, %v2941_v0  ;;  %v1742_v42 = vrot.slane %v358_v41, 4 }
 0x3bb   : > { %v693_v45 = vmul.f32 %v2761_v43, %v689_v44  ;;  %2585 = vmatprep.subr.mxu1 %v2941_v0 }
 0x3bc   : > { %v2559_v46 = vpop.f32.mrf.mxu1 }
 0x3bd   : > { %2563 = vmatmul.mubr.msk.f32.vlgmr.msra.gmra.mxu0 %vm363_vm2, %v693_v45 }
 0x3be   : > { %2571 = vmatpush3.xpose.msk.msra.mxu0 %vm363_vm2, %v850_v34  ;;  %2572 = vmatprep.mubr.msk.f32.mxu0 %vm2942_vm0, %v2941_v0 }
 0x3bf   : > { %2580 = vmatprep.subr.mxu0 %v2941_v0 }
 0x3c1   : > { %2573 = vmatmul.mubr.msk.f32.vlgmr.msra.gmra.mxu0 %vm363_vm2, %v848_v35 }
 0x3c2   : > { %2582 = vmatprep.mubr.msk.f32.mxu0 %vm2942_vm0, %v2941_v0  ;;  %2581 = vmatpush3.msk.msra.mxu0 %vm699_vm4, %v357_v62 }
 0x3c3   : > { %2590 = vmatprep.subr.mxu0 %v2941_v0 }
 0x479   : > { %v843_v47 = vpop.f32.mrf.mxu1 }
 0x47b   : > { %v2569_v48 = vpop.f32.mrf.mxu1 }
 0x47d   : > { %v768_v49 = vpop.f32.mrf.mxu0 }
 0x47e   : > { %v3198_v50 = vadd.f32 %v843_v47, %v768_v49 }
 0x47f   : > { %v2564_v51 = vpop.f32.mrf.mxu0 }
 0x481   : > { %v921_v52 = vpop.f32.mrf.mxu0 }
 0x482   : > { %v925_v53 = vsel %vm439_vm3, %v921_v52, -inf }
 0x483   : > { %926 = vmax.xlane.f32.xlu1 %v925_v53  ;;  %v2574_v54 = vpop.f32.mrf.mxu0 }
 0x494   : > { %1090 = vrot.lane.b32.xlu1 %v3149_v10, %s2952_s9 }
 0x50c   : > { %v927_v55 = vpop.xlane.xlu1 %926 }
 0x50d   : > { %v928_v56 = vsub.f32 %v921_v52, %v927_v55 }
 0x50f   : > { %v929_v57 = vmul.f32 1.442695, %v928_v56 }
 0x510   : > { %v1091_v61 = vpop.permute.xlu1 %1090 }
 0x511   : > { %2762 = vpow2.f32 %v929_v57 }
 0x51e   : > { %v2763_v58 = vpop.eup %2762 }
 0x51f   : > { %2578 = vmatmul.mubr.msk.f32.vlgmr.msra.gmra.mxu1 %vm439_vm3, %v2763_v58  ;;  %v931_v60 = vsel %vm439_vm3, %v2763_v58, 0.0 }
 0x520   : > { %2586 = vmatpush3.xpose.msk.msra.mxu1 %vm363_vm2, %v1093_v59  ;;  %932 = vadd.xlane.f32.xlu1 %v931_v60 }
 0x521   : > { %2587 = vmatprep.mubr.msk.f32.mxu1 %vm2942_vm0, %v2941_v0  ;;  %2595 = vmatprep.subr.mxu1 %v2941_v0 }
 0x523   : > { %2588 = vmatmul.mubr.msk.f32.vlgmr.msra.gmra.mxu1 %vm363_vm2, %v1091_v61 }
 0x524   : > { %2597 = vmatprep.mubr.msk.f32.mxu1 %vm2942_vm0, %v2941_v0  ;;  %2596 = vmatpush3.msk.msra.mxu1 %vm699_vm4, %v1256_v63 }
 0x525   : > { %2605 = vmatprep.subr.mxu1 %v2941_v0 }
 0x531   : > { %1335 = vrot.lane.b32.xlu1 %v3145_v8, %s2953_s16 }
 0x535   : > { %1333 = vrot.lane.b32.xlu1 %v3149_v10, %s2954_s17  ;;  %s2473_s17 = sshll.u32 %s3018_s22, 7  ;;  %s2966_s22 = smov [#allocation8]  }
 0x5a9   : > { %v933_v1 = vpop.xlane.xlu1 %932 }
 0x5aa   : > { %2764 = vrcp.f32 %v933_v1 }
 0x5ad   : > { %v1336_v15 = vpop.permute.xlu1 %1335 }
 0x5b1   : > { %v1334_v18 = vpop.permute.xlu1 %1333 }
 0x5b7   : > { %v2765_v2 = vpop.eup %2764 }
 0x5df   : > { %v1008_v3 = vpop.f32.mrf.mxu1 }
 0x5e0   : > { %v1012_v4 = vmul.f32 %v2765_v2, %v1008_v3 }
 0x5e1   : > { %v2579_v5 = vpop.f32.mrf.mxu1 }
 0x5e2   : > { %2583 = vmatmul.mubr.msk.f32.vlgmr.msra.gmra.mxu0 %vm363_vm2, %v1012_v4 }
 0x5e3   : > { %v1164_v6 = vpop.f32.mrf.mxu1  ;;  %2592 = vmatprep.mubr.msk.f32.mxu0 %vm2942_vm0, %v2941_v0 }
 0x5e4   : > { %v1168_v7 = vsel %vm439_vm3, %v1164_v6, -inf }
 0x5e5   : > { %1169 = vmax.xlane.f32.xlu0 %v1168_v7  ;;  %v2589_v9 = vpop.f32.mrf.mxu1 }
 0x5fb   : > { %1179 = vrot.lane.b32.xlu0 %v3145_v8, %s2955_s24  ;;  %s268_s24 = scalar_lea.vmem [#allocation8], %s2425_s14 }
 0x66e   : > { %v1170_v11 = vpop.xlane.xlu0 %1169 }
 0x66f   : > { %v1171_v12 = vsub.f32 %v1164_v6, %v1170_v11 }
 0x671   : > { %v1172_v13 = vmul.f32 1.442695, %v1171_v12 }
 0x672   : > { %v1180_v14 = vpop.permute.xlu0 %1179 }
 0x673   : > { %2766 = vpow2.f32 %v1172_v13  ;;  %2591 = vmatpush3.msra.mxu0 %v1180_v14 }
 0x674   : > { %2600 = vmatprep.subr.mxu0 %v2941_v0 }
 0x680   : > { %v2767_v16 = vpop.eup %2766 }
 0x681   : > { %2593 = vmatmul.mubr.msk.f32.vlgmr.msra.gmra.mxu0 %vm439_vm3, %v2767_v16  ;;  %v1174_v17 = vsel %vm439_vm3, %v2767_v16, 0.0 }
 0x682   : > { %2601 = vmatpush3.xpose.msk.msra.mxu0 %vm363_vm2, %v1336_v15  ;;  %1175 = vadd.xlane.f32.xlu0 %v1174_v17 }
 0x683   : > { %2602 = vmatprep.mubr.msk.f32.mxu0 %vm2942_vm0, %v2941_v0  ;;  %2610 = vmatprep.subr.mxu0 %v2941_v0 }
 0x685   : > { %2603 = vmatmul.mubr.msk.f32.vlgmr.msra.gmra.mxu0 %vm363_vm2, %v1334_v18 }
 0x686   : > { %2612 = vmatprep.mubr.msk.f32.mxu0 %vm2942_vm0, %v2941_v0  ;;  %2611 = vmatpush3.msk.msra.mxu0 %vm699_vm4, %v358_v41 }
 0x687   : > { %2620 = vmatprep.subr.mxu0 %v2941_v0 }
 0x698   : > { %1422 = vrot.lane.b32.xlu0 %v3145_v8, %s2956_s26  ;;  %s2328_s26 = sshll.u32 %s268_s24, 4  ;;  %s2329_s26 = int_to_ptr.vmem [resolvable:$true] %s2328_s26 }
 0x69c   : > { %1576 = vrot.lane.b32.xlu0 %v3149_v10, %s2957_s8 }
 0x6a2   : > { %v1085_v19 = vpop.f32.mrf.mxu0 }
 0x6a3   : > { %v1089_v20 = vadd.f32 %v1085_v19, %v3198_v50  ;;  %v359_v19 = vld [vmem:[#allocation7 + $0x18] sm:$0xff] }
 0x6a4   : > { %v2584_v21 = vpop.f32.mrf.mxu0 }
 0x70b   : > { %v1176_v22 = vpop.xlane.xlu0 %1175 }
 0x70c   : > { %2768 = vrcp.f32 %v1176_v22 }
 0x70f   : > { %v1423_v27 = vpop.permute.xlu0 %1422 }
 0x713   : > { %v1577_v37 = vpop.permute.xlu0 %1576 }
 0x719   : > { %v2769_v23 = vpop.eup %2768 }
 0x741   : > { %v1251_v24 = vpop.f32.mrf.mxu0 }
 0x742   : > { %v1255_v25 = vmul.f32 %v2769_v23, %v1251_v24 }
 0x743   : > { %v2594_v26 = vpop.f32.mrf.mxu0 }
 0x744   : > { %2598 = vmatmul.mubr.msk.f32.vlgmr.msra.gmra.mxu1 %vm363_vm2, %v1255_v25 }
 0x745   : > { %2606 = vmatpush3.msra.mxu1 %v1423_v27  ;;  %v1407_v28 = vpop.f32.mrf.mxu0  ;;  %2607 = vmatprep.mubr.msk.f32.mxu1 %vm2942_vm0, %v2941_v0 }
 0x746   : > { %v1411_v29 = vsel %vm439_vm3, %v1407_v28, -inf  ;;  %2615 = vmatprep.subr.mxu1 %v2941_v0 }
 0x747   : > { %1412 = vmax.xlane.f32.xlu1 %v1411_v29  ;;  %v2604_v30 = vpop.f32.mrf.mxu0 }
 0x758   : > { %1578 = vrot.lane.b32.xlu1 %v3145_v8, %s2958_s10 }
 0x7d0   : > { %v1413_v31 = vpop.xlane.xlu1 %1412 }
 0x7d1   : > { %v1414_v32 = vsub.f32 %v1407_v28, %v1413_v31 }
 0x7d3   : > { %v1415_v33 = vmul.f32 1.442695, %v1414_v32 }
 0x7d4   : > { %v1579_v35 = vpop.permute.xlu1 %1578 }
 0x7d5   : > { %2770 = vpow2.f32 %v1415_v33 }
 0x7e2   : > { %v2771_v34 = vpop.eup %2770 }
 0x7e3   : > { %2608 = vmatmul.mubr.msk.f32.vlgmr.msra.gmra.mxu1 %vm439_vm3, %v2771_v34  ;;  %v1417_v36 = vsel %vm439_vm3, %v2771_v34, 0.0 }
 0x7e4   : > { %2616 = vmatpush3.xpose.msk.msra.mxu1 %vm363_vm2, %v1579_v35  ;;  %1418 = vadd.xlane.f32.xlu1 %v1417_v36 }
 0x7e5   : > { %2617 = vmatprep.mubr.msk.f32.mxu1 %vm2942_vm0, %v2941_v0  ;;  %2625 = vmatprep.subr.mxu1 %v2941_v0 }
 0x7e7   : > { %2618 = vmatmul.mubr.msk.f32.vlgmr.msra.gmra.mxu1 %vm363_vm2, %v1577_v37 }
 0x7e8   : > { %2627 = vmatprep.mubr.msk.f32.mxu1 %vm2942_vm0, %v2941_v0  ;;  %2626 = vmatpush3.msk.msra.mxu1 %vm699_vm4, %v1742_v42  ;;  %v2471_v42 = vld [vmem:[%s3344_s4] ss:$0 sm:$0xff] }
 0x7e9   : > { %2635 = vmatprep.subr.mxu1 %v2941_v0 }
 0x7f5   : > { %1821 = vrot.lane.b32.xlu1 %v3145_v8, %s2959_s11  ;;  %s2326_s11 = scalar_lea.hbm %s3345_s5, %s2473_s17 }
 0x7f9   : > { %1819 = vrot.lane.b32.xlu1 %v3149_v10, %s2960_s12  ;;  %s2315_s12 = scalar_lea.sflag [#allocation4], %s3115_s13 }
 0x804   : > { %v1328_v38 = vpop.f32.mrf.mxu1 }
 0x805   : > { %v1332_v39 = vadd.f32 %v1328_v38, %v1089_v20  ;;  %v2228_v20 = vrot.slane %v359_v19, 4 }
 0x806   : > { %v2599_v40 = vpop.f32.mrf.mxu1 }
 0x86d   : > { %v1419_v43 = vpop.xlane.xlu1 %1418 }
 0x86e   : > { %2772 = vrcp.f32 %v1419_v43 }
 0x871   : > { %v1822_v55 = vpop.permute.xlu1 %1821 }
 0x875   : > { %v1820_v58 = vpop.permute.xlu1 %1819 }
 0x87b   : > { %v2773_v44 = vpop.eup %2772 }
 0x8a3   : > { %v1494_v45 = vpop.f32.mrf.mxu1 }
 0x8a4   : > { %v1498_v46 = vmul.f32 %v2773_v44, %v1494_v45 }
 0x8a5   : > { %v2609_v47 = vpop.f32.mrf.mxu1 }
 0x8a6   : > { %2613 = vmatmul.mubr.msk.f32.vlgmr.msra.gmra.mxu0 %vm363_vm2, %v1498_v46 }
 0x8a7   : > { %v1650_v48 = vpop.f32.mrf.mxu1  ;;  %2622 = vmatprep.mubr.msk.f32.mxu0 %vm2942_vm0, %v2941_v0 }
 0x8a8   : > { %v1654_v49 = vsel %vm439_vm3, %v1650_v48, -inf }
 0x8a9   : > { %1655 = vmax.xlane.f32.xlu0 %v1654_v49  ;;  %v2619_v50 = vpop.f32.mrf.mxu1 }
 0x8bf   : > { %1665 = vrot.lane.b32.xlu0 %v3145_v8, %s2961_s30  ;;  %s2866_s30 = scalar_lea.vmem %s2329_s26, 128 }
 0x8c0   : > { %p2867_p11 = scmp.ne.s32.totalorder %s2329_s26, %s2866_s30 }
 0x8c2   : > { %p2868_p1 = pnand %p2867_p11, %p3361_p0 }
 0x8c4   : > { %p2869_p2 = pneg %p2868_p1 }
 0x932   : > { %v1656_v51 = vpop.xlane.xlu0 %1655 }
 0x933   : > { %v1657_v52 = vsub.f32 %v1650_v48, %v1656_v51 }
 0x935   : > { %v1658_v53 = vmul.f32 1.442695, %v1657_v52 }
 0x936   : > { %v1666_v54 = vpop.permute.xlu0 %1665 }
 0x937   : > { %2774 = vpow2.f32 %v1658_v53  ;;  %2621 = vmatpush3.msra.mxu0 %v1666_v54 }
 0x938   : > { %2630 = vmatprep.subr.mxu0 %v2941_v0 }
 0x944   : > { %v2775_v56 = vpop.eup %2774 }
 0x945   : > { %2623 = vmatmul.mubr.msk.f32.vlgmr.msra.gmra.mxu0 %vm439_vm3, %v2775_v56  ;;  %v1660_v57 = vsel %vm439_vm3, %v2775_v56, 0.0 }
 0x946   : > { %2631 = vmatpush3.xpose.msk.msra.mxu0 %vm363_vm2, %v1822_v55  ;;  %1661 = vadd.xlane.f32.xlu0 %v1660_v57 }
 0x947   : > { %2632 = vmatprep.mubr.msk.f32.mxu0 %vm2942_vm0, %v2941_v0  ;;  %2640 = vmatprep.subr.mxu0 %v2941_v0 }
 0x949   : > { %2633 = vmatmul.mubr.msk.f32.vlgmr.msra.gmra.mxu0 %vm363_vm2, %v1820_v58 }
 0x94a   : > { %2642 = vmatprep.mubr.msk.f32.mxu0 %vm2942_vm0, %v2941_v0  ;;  %2641 = vmatpush3.msk.msra.mxu0 %vm699_vm4, %v359_v19 }
 0x94b   : > { %2650 = vmatprep.subr.mxu0 %v2941_v0 }
 0x95c   : > { %1908 = vrot.lane.b32.xlu0 %v3145_v8, %s2962_s29  ;;  %s2870_s29 = sshll.u32 %s2966_s22, 4  ;;  %s2871_s29 = int_to_ptr.vmem [resolvable:$false] %s2870_s29 }
 0x95d   : > { %s2872_s14 = scalar_lea.vmem %s2871_s29, 256  ;;  %p2873_p6 = scmp.lt.s32.totalorder %s2329_s26, %s2871_s29 }
 0x95e   : > { %p2874_p12 = scmp.lt.s32.totalorder %s2872_s14, %s2866_s30 }
 0x960   : > { %2062 = vrot.lane.b32.xlu0 %v3149_v10, %s2963_s6  ;;  %p2875_p7 = por %p2874_p12, %p2873_p6 }
 0x962   : > { %p2876_p9 = pnand %p2875_p7, %p2869_p2 }
 0x966   : > { %v1571_v59 = vpop.f32.mrf.mxu0 }
 0x967   : > { %v1575_v60 = vadd.f32 %v1571_v59, %v1332_v39 }
 0x968   : > { %v2614_v61 = vpop.f32.mrf.mxu0 }
 0x9cf   : > { %v1662_v62 = vpop.xlane.xlu0 %1661 }
 0x9d0   : > { %2776 = vrcp.f32 %v1662_v62 }
 0x9d3   : > { %v1909_v4 = vpop.permute.xlu0 %1908 }
 0x9d7   : > { %v2063_v15 = vpop.permute.xlu0 %2062 }
 0x9dd   : > { %v2777_v63 = vpop.eup %2776 }
 0xa05   : > { %v1737_v1 = vpop.f32.mrf.mxu0 }
 0xa06   : > { %v1741_v2 = vmul.f32 %v2777_v63, %v1737_v1 }
 0xa07   : > { %v2624_v3 = vpop.f32.mrf.mxu0 }
 0xa08   : > { %2628 = vmatmul.mubr.msk.f32.vlgmr.msra.gmra.mxu1 %vm363_vm2, %v1741_v2 }
 0xa09   : > { %2636 = vmatpush3.msra.mxu1 %v1909_v4  ;;  %v1893_v5 = vpop.f32.mrf.mxu0  ;;  %2637 = vmatprep.mubr.msk.f32.mxu1 %vm2942_vm0, %v2941_v0 }
 0xa0a   : > { %v1897_v6 = vsel %vm439_vm3, %v1893_v5, -inf  ;;  %2645 = vmatprep.subr.mxu1 %v2941_v0 }
 0xa0b   : > { %1898 = vmax.xlane.f32.xlu1 %v1897_v6  ;;  %v2634_v10 = vpop.f32.mrf.mxu0 }
 0xa1c   : > { %2064 = vrot.lane.b32.xlu1 %v3145_v8, %s2964_s28 }
 0xa94   : > { %v1899_v7 = vpop.xlane.xlu1 %1898 }
 0xa95   : > { %v1900_v9 = vsub.f32 %v1893_v5, %v1899_v7 }
 0xa97   : > { %v1901_v11 = vmul.f32 1.442695, %v1900_v9 }
 0xa98   : > { %v2065_v13 = vpop.permute.xlu1 %2064 }
 0xa99   : > { %2778 = vpow2.f32 %v1901_v11 }
 0xaa6   : > { %v2779_v12 = vpop.eup %2778 }
 0xaa7   : > { %2638 = vmatmul.mubr.msk.f32.vlgmr.msra.gmra.mxu1 %vm439_vm3, %v2779_v12  ;;  %v1903_v14 = vsel %vm439_vm3, %v2779_v12, 0.0 }
 0xaa8   : > { %2646 = vmatpush3.xpose.msk.msra.mxu1 %vm363_vm2, %v2065_v13  ;;  %1904 = vadd.xlane.f32.xlu1 %v1903_v14 }
 0xaa9   : > { %2647 = vmatprep.mubr.msk.f32.mxu1 %vm2942_vm0, %v2941_v0  ;;  %2655 = vmatprep.subr.mxu1 %v2941_v0 }
 0xaab   : > { %2648 = vmatmul.mubr.msk.f32.vlgmr.msra.gmra.mxu1 %vm363_vm2, %v2063_v15 }
 0xaac   : > { %2657 = vmatprep.mubr.msk.f32.mxu1 %vm2942_vm0, %v2941_v0  ;;  %2656 = vmatpush3.msk.msra.mxu1 %vm699_vm4, %v2228_v20 }
 0xac8   : > { %v1814_v16 = vpop.f32.mrf.mxu1 }
 0xac9   : > { %v1818_v17 = vadd.f32 %v1814_v16, %v1575_v60 }
 0xaca   : > { %v2629_v18 = vpop.f32.mrf.mxu1 }
 0xb31   : > { %v1905_v21 = vpop.xlane.xlu1 %1904 }
 0xb32   : > { %2780 = vrcp.f32 %v1905_v21 }
 0xb3f   : > { %v2781_v22 = vpop.eup %2780 }
 0xb67   : > { %v1980_v23 = vpop.f32.mrf.mxu1 }
 0xb68   : > { %v1984_v24 = vmul.f32 %v2781_v22, %v1980_v23 }
 0xb69   : > { %v2639_v25 = vpop.f32.mrf.mxu1 }
 0xb6a   : > { %2643 = vmatmul.mubr.msk.f32.vlgmr.msra.gmra.mxu0 %vm363_vm2, %v1984_v24 }
 0xb6b   : > { %v2136_v26 = vpop.f32.mrf.mxu1  ;;  %2652 = vmatprep.mubr.msk.f32.mxu0 %vm2942_vm0, %v2941_v0 }
 0xb6c   : > { %v2140_v27 = vsel %vm439_vm3, %v2136_v26, -inf }
 0xb6d   : > { %2141 = vmax.xlane.f32.xlu0 %v2140_v27  ;;  %v2649_v28 = vpop.f32.mrf.mxu1 }
 0xb83   : > { %2151 = vrot.lane.b32.xlu0 %v3145_v8, %s2965_s7 }
 0xbf6   : > { %v2142_v29 = vpop.xlane.xlu0 %2141 }
 0xbf7   : > { %v2143_v30 = vsub.f32 %v2136_v26, %v2142_v29 }
 0xbf9   : > { %v2144_v31 = vmul.f32 1.442695, %v2143_v30 }
 0xbfa   : > { %v2152_v32 = vpop.permute.xlu0 %2151 }
 0xbfb   : > { %2782 = vpow2.f32 %v2144_v31  ;;  %2651 = vmatpush3.msra.mxu0 %v2152_v32 }
 0xc08   : > { %v2783_v33 = vpop.eup %2782 }
 0xc09   : > { %2653 = vmatmul.mubr.msk.f32.vlgmr.msra.gmra.mxu0 %vm439_vm3, %v2783_v33  ;;  %v2146_v0 = vsel %vm439_vm3, %v2783_v33, 0.0 }
 0xc0a   : > { %2147 = vadd.xlane.f32.xlu1 %v2146_v0 }
 0xc2a   : > { %v2057_v34 = vpop.f32.mrf.mxu0 }
 0xc2b   : > { %v2061_v35 = vadd.f32 %v2057_v34, %v1818_v17 }
 0xc2c   : > { %v2644_v36 = vpop.f32.mrf.mxu0 }
 0xc93   : > { %v2148_v37 = vpop.xlane.xlu1 %2147 }
 0xc94   : > { %2784 = vrcp.f32 %v2148_v37 }
 0xca1   : > { %v2785_v8 = vpop.eup %2784 }
 0xcc9   : > { %v2223_v38 = vpop.f32.mrf.mxu0 }
 0xcca   : > { %v2227_v39 = vmul.f32 %v2785_v8, %v2223_v38 }
 0xccb   : > { %v2654_v40 = vpop.f32.mrf.mxu0 }
 0xccc   : > { %2658 = vmatmul.mubr.msk.f32.vlgmr.msra.gmra.mxu1 %vm363_vm2, %v2227_v39 }
 0xd8c   : > { %v2300_v41 = vpop.f32.mrf.mxu1 }
 0xd8d   : > { %v2304_v43 = vadd.f32 %v2300_v41, %v2061_v35 }
 0xd8e   : > { %v2659_v44 = vpop.f32.mrf.mxu1 }
 0xd8f   : > { %v2312_v45 = vadd.f32 %v2471_v42, %v2304_v43 }
 0xd91   : > { %2313 = vst.msk [vmem:[%s268_s24] sm:$0xff] %vm281_vm1, %v2312_v45 }
 0xd92   : > { %2879 = shalt.err (!%p2876_p9)
}
 0xd93   : > { %s2880_s6 = scalar_lea.hbm %s2326_s11, 128  ;;  %s2884_s7 = scalar_lea.hbm %s3345_s5, 256 }
 0xd94   : > { %p2881_p13 = scmp.ne.s32.totalorder %s2326_s11, %s2880_s6  ;;  %p2885_p4 = scmp.lt.s32.totalorder %s2326_s11, %s3345_s5 }
 0xd95   : > { %p2886_p8 = scmp.lt.s32.totalorder %s2884_s7, %s2880_s6 }
 0xd96   : > { %p2882_p5 = pnand %p2881_p13, %p3361_p0 }
 0xd97   : > { %p2887_p3 = por %p2886_p8, %p2885_p4 }
 0xd98   : > { %p2883_p10 = pneg %p2882_p5 }
 0xd9a   : > { %p2888_p11 = pnand %p2887_p3, %p2883_p10 }
 0xd9c   : > { %2891 = shalt.err (!%p2888_p11)
}
 0xd9d   : > { %2670 = dma.vmem_to_hbm [thread:$0]  (%p3361_p0), %s2329_s26, 128, %s2326_s11, %s2315_s12  }
 0xd9e PF: > { %s2340_s17 = sand.u32 1, %s2922_s18   ;;  %p3362_p1 = scmp.ne.s32.totalorder %s3351_s25, 0 }
 0xd9f   : > { %p3363_p2 = scmp.ge.s32.totalorder %s2934_s21, 2  ;;  %s2341_s24 = scalar_lea.sflag [#allocation4], %s2340_s17 }
 0xda1   : > { %p2684_p6 = pnand %p3363_p2, %p3362_p1 }
 0xda3   : > { %p2685_p12 = pneg %p2684_p6 }
 0xda5   : > { %2917 = dma.done.wait (%p2685_p12), %s2341_s24, 128  }
 0xda6   : > { %2919 = vsyncadd (%p2685_p12), %s2341_s24, 4294967168  ;;  %p19_p7 = scmp.ge.s32.totalorder %s3069_s15, 4   ;;  %s3364_s18 = smov %s2926_s19 }
 0xda7   : > { %s3365_s19 = smov %s2930_s20  ;;  %s3366_s20 = smov %s3085_s27 }
 0xda8   : > { %s3367_s21 = smov %s3069_s15  ;;  %21 = sbr.rel (!%p19_p7) target bundleno = 6 (0x6), region = 93 }
 0xdad   :  { %2346 = vsyncpa [#allocation3], 1 }
 0xdae   :  { %2348 = vsyncpa [#allocation3 + $0x1], 1 }
 0xdaf   :  { %2349 = vsyncpa [#allocation6], 1 }
 0xdb0   :  { %2350 = vsyncpa [#allocation4], 1 }
 0xdb1   :  { %2352 = vsyncpa [#allocation4 + $0x1], 1 }

</bundles_post_ra>
